<compile_context>
chip_gen: v5e
topology: v5e:2x2
jax: 0.10.0
libtpu: 0.0.40
codegen_flags: <defaults>
</compile_context>

<pallas_src>
import math

import jax
import jax.numpy as jnp
from jax.experimental import pallas as pl
from jax.experimental.pallas import tpu as pltpu

LANE = 128  # TPU lane width; every internal lane dim is zero-padded to this


def _round_up(n, m):
    return ((n + m - 1) // m) * m


def _layernorm_padded(v, g, b, true_dim, eps=1e-5):
    """LayerNorm over the first `true_dim` lanes of a zero-lane-padded tile.

    Padded lanes of `v` are zero, so plain sums give the correct statistics;
    zero-padded gamma/beta keep the padded lanes exactly zero in the output.
    """
    inv_d = 1.0 / true_dim
    mu = jnp.sum(v, axis=-1, keepdims=True) * inv_d
    var = jnp.sum(v * v, axis=-1, keepdims=True) * inv_d - mu * mu
    return (v - mu) * jax.lax.rsqrt(var + eps) * g + b


def make_network_kernel(*, num_layers, num_heads, head_dim, memory_len,
                        seq_len, dim, dff, n_actions):
    L, H, DH, M = num_layers, num_heads, head_dim, memory_len
    S, D, DFF, A = seq_len, dim, dff, n_actions
    DP = LANE
    DFFP = _round_up(DFF, LANE)
    # packed per-layer weight-slab column offsets (all multiples of 128)
    CQ, CK, CV = 0, DP, 2 * DP
    CO, C1, C2 = 3 * DP, 4 * DP, 4 * DP + DFFP
    scale = 1.0 / math.sqrt(DH)
    bf16, f32 = jnp.bfloat16, jnp.float32

    def kernel(x_ref, hid_ref, wbig_ref, rowp_ref, wglob_ref,
               q_out_ref, hid_out_ref,      # outputs: (S, DP), (L, M, DP)
               kv_buf):                     # scratch: (M+S, DP) f32
        # ---- per-head lane mask, built in-kernel, hoisted above the loop ----
        # heads are stacked along the sublane axis; head h owns lanes
        # [h*DH, (h+1)*DH).  Built with pure iota comparisons (no division).
        row_idx = jax.lax.broadcasted_iota(jnp.int32, (H * S, DP), 0)
        lane_idx = jax.lax.broadcasted_iota(jnp.int32, (H * S, DP), 1)
        maskq = jnp.zeros((H * S, DP), f32)
        for hh in range(H):
            blk = ((row_idx >= hh * S) & (row_idx < (hh + 1) * S) &
                   (lane_idx >= hh * DH) & (lane_idx < (hh + 1) * DH))
            maskq = jnp.where(blk, 1.0, maskq)

        gbias = rowp_ref[L]                       # (16, DP): global biases

        # ---------------- embed ----------------
        x = jnp.dot(x_ref[...].astype(bf16), wglob_ref[:, 0:DP],
                    preferred_element_type=f32) + gbias[0:1, :]     # (S, DP)

        # ------- block-recurrent layers (static unroll; L is small) ---------
        # TODO(synk): switch to lax.fori_loop with dynamic wbig_ref[l]
        # indexing if num_layers grows (vreg pressure / compile time).
        for l in range(L):
            wl = wbig_ref[l]                      # (ROWS, WCOLS) bf16
            rp = rowp_ref[l]                      # (16, DP) f32 packed rows
            mem = hid_ref[l]                      # (M, DP) f32

            # --- attention (pre-LN): Q from LN(x); K/V over [memory, LN(x)] ---
            h = _layernorm_padded(x, rp[0:1, :], rp[1:2, :], D)
            kv_buf[0:M, :] = mem                  # aligned f32 tile store
            kv_buf[M:M + S, :] = h                # aligned f32 tile store
            kv = kv_buf[...].astype(bf16)         # (M+S, DP)

            # fused QKV projection; each segment is its own 128-lane tile
            qkv = jnp.dot(kv, wl[0:DP, CQ:CQ + 3 * DP],
                          preferred_element_type=f32)               # (M+S, 3DP)
            q = qkv[M:, CQ:CQ + DP] + rp[6:7, :]                    # (S, DP)
            k = (qkv[:, CK:CK + DP] + rp[7:8, :]).astype(bf16)      # (M+S, DP)
            v = (qkv[:, CV:CV + DP] + rp[8:9, :]).astype(bf16)      # (M+S, DP)

            # heads stacked along sublanes, full 128-lane width everywhere
            qs = (jnp.tile(q, (H, 1)) * maskq).astype(bf16)         # (H*S, DP)
            s = jax.lax.dot_general(qs, k, (((1,), (1,)), ((), ())),
                                    preferred_element_type=f32) * scale
            s = s - jnp.max(s, axis=-1, keepdims=True)
            p = jnp.exp(s)
            p = p * pl.reciprocal(jnp.sum(p, axis=-1, keepdims=True),
                                  approx=True)
            o = jnp.dot(p.astype(bf16), v,
                        preferred_element_type=f32) * maskq         # (H*S, DP)
            attn = o[0:S, :]
            for hh in range(1, H):                # aligned sublane-block adds
                attn = attn + o[hh * S:(hh + 1) * S, :]
            attn = jnp.dot(attn.astype(bf16), wl[0:DP, CO:CO + DP],
                           preferred_element_type=f32) + rp[4:5, :]
            x = x + attn

            # --- feed-forward (pre-LN, GELU) ---
            h2 = _layernorm_padded(x, rp[2:3, :], rp[3:4, :], D)
            ff = jnp.dot(h2.astype(bf16), wl[0:DP, C1:C1 + DFFP],
                         preferred_element_type=f32) + rp[9:10, :]
            ff = jax.nn.gelu(ff, approximate=True)
            ff = jnp.dot(ff.astype(bf16), wl[0:DFFP, C2:C2 + DP],
                         preferred_element_type=f32) + rp[5:6, :]
            x = x + ff

            # --- memory update: last M rows of [mem, x]; lane-dense store ---
            if S >= M:
                hid_out_ref[l] = x[S - M:, :]
            else:
                hid_out_ref[l, 0:M - S, :] = mem[S:, :]
                hid_out_ref[l, M - S:, :] = x

        # ------ fused dueling head: [A | V] columns, lane-dense output -------
        av = jnp.dot(x.astype(bf16), wglob_ref[:, DP:2 * DP],
                     preferred_element_type=f32) + gbias[1:2, :]    # (S, DP)
        lane = jax.lax.broadcasted_iota(jnp.int32, (S, DP), 1)
        adv_mask = (lane < A).astype(f32)
        val_mask = (lane == A).astype(f32)
        adv_mean = jnp.sum(av * adv_mask, axis=-1, keepdims=True) * (1.0 / A)
        value = jnp.sum(av * val_mask, axis=-1, keepdims=True)
        # lanes [0:A) hold Q = V + A - mean(A); remaining lanes are ignored.
        q_out_ref[...] = av + (value - adv_mean)

    return kernel


# ------------------------------ params -------------------------------------- #

def init_params(key, *, memory_len, dim, num_layers, num_heads,
                n_observations, n_actions):
    DP = LANE
    dff = 4 * dim
    DFFP = _round_up(dff, LANE)
    ROWS = max(DP, DFFP)
    CQ, CK, CV = 0, DP, 2 * DP
    CO, C1, C2 = 3 * DP, 4 * DP, 4 * DP + DFFP
    WCOLS = 5 * DP + DFFP
    L, D, DFF, A = num_layers, dim, dff, n_actions

    keys = iter(jax.random.split(key, 6 * L + 3))

    def nrm(shape):   # torch init: N(0, 0.02); biases are zeroed
        return 0.02 * jax.random.normal(next(keys), shape, jnp.float32)

    # per-layer weight slab: lanes = [Wq | Wk | Wv | Wo | W1 | W2], bf16
    wbig = jnp.zeros((L, ROWS, WCOLS), jnp.float32)
    for l in range(L):
        wbig = wbig.at[l, :D, CQ:CQ + D].set(nrm((D, D)))
        wbig = wbig.at[l, :D, CK:CK + D].set(nrm((D, D)))
        wbig = wbig.at[l, :D, CV:CV + D].set(nrm((D, D)))
        wbig = wbig.at[l, :D, CO:CO + D].set(nrm((D, D)))
        wbig = wbig.at[l, :D, C1:C1 + DFF].set(nrm((D, DFF)))
        wbig = wbig.at[l, :DFF, C2:C2 + D].set(nrm((DFF, D)))
    wbig = wbig.astype(jnp.bfloat16)

    # packed row params (L layers + 1 "global" slot), f32:
    #  per layer : 0 ln1_g, 1 ln1_b, 2 ln2_g, 3 ln2_b, 4 b_attn_out,
    #              5 b_ffn_out, 6 bq, 7 bk, 8 bv, 9 b_ffn_hidden
    #  slot L    : 0 b_embed, 1 b_AV
    rowp = jnp.zeros((L + 1, 16, DP), jnp.float32)
    rowp = rowp.at[:L, 0, :D].set(1.0)   # ln1 gamma
    rowp = rowp.at[:L, 2, :D].set(1.0)   # ln2 gamma
    # all Linear/LayerNorm biases are zero per MemoryTransformerQ._init_weights

    # global weights: lanes = [W_embed | W_AV], bf16
    wglob = jnp.zeros((DP, 2 * DP), jnp.float32)
    wglob = wglob.at[:n_observations, :D].set(nrm((n_observations, D)))
    wglob = wglob.at[:D, DP:DP + A].set(nrm((D, A)))          # advantage head
    wglob = wglob.at[:D, DP + A:DP + A + 1].set(nrm((D, 1)))  # value head
    wglob = wglob.astype(jnp.bfloat16)

    return {
        "config": dict(memory_len=memory_len, dim=dim, num_layers=num_layers,
                       num_heads=num_heads, n_observations=n_observations,
                       n_actions=n_actions, dff=dff),
        "wbig": wbig, "rowp": rowp, "wglob": wglob,
    }


# ------------------------------ wrapper -------------------------------------- #

def memory_transformer_q(x, params, hidden_state=None):
    cfg = params["config"]
    D, L, M = cfg["dim"], cfg["num_layers"], cfg["memory_len"]
    H, A, DFF = cfg["num_heads"], cfg["n_actions"], cfg["dff"]
    n_obs = cfg["n_observations"]
    DP = LANE

    x = jnp.asarray(x, jnp.float32)
    if x.ndim == 3:          # (B, T, n_obs) -> flatten like x.view(1, -1, dim)
        x = x.reshape(-1, x.shape[-1])
    S = x.shape[0]
    assert S % 8 == 0 and M % 8 == 0, "seq / memory_len must be multiples of 8"

    # lane-pad the observation input once in the wrapper (aligned input DMA)
    x_pad = jnp.zeros((S, DP), jnp.float32).at[:, :n_obs].set(x)

    if hidden_state is None:
        hid_pad = jnp.zeros((L, M, DP), jnp.float32)
    else:
        hid_pad = jnp.zeros((L, M, DP), jnp.float32).at[:, :, :D].set(
            jnp.asarray(hidden_state, jnp.float32))

    kernel = make_network_kernel(
        num_layers=L, num_heads=H, head_dim=D // H, memory_len=M, seq_len=S,
        dim=D, dff=DFF, n_actions=A)

    q_pad, hid_out = pl.pallas_call(
        kernel,
        out_shape=(jax.ShapeDtypeStruct((S, DP), jnp.float32),
                   jax.ShapeDtypeStruct((L, M, DP), jnp.float32)),
        scratch_shapes=[pltpu.VMEM((M + S, DP), jnp.float32)],
    )(x_pad, hid_pad, params["wbig"], params["rowp"], params["wglob"])

    # lane-dense kernel outputs are sliced back to logical widths outside
    return q_pad[:, :A], hid_out[:, :, :D]


# -------------------------------- main --------------------------------------- #

if __name__ == "__main__":
    n_observations, n_actions = 4, 2
    dim, num_heads, num_layers, memory_len = 32, 4, 2, 8
    seq = 8   # flattened batch*time sequence length

    key = jax.random.PRNGKey(0)
    pkey, xkey = jax.random.split(key)

    params = init_params(pkey, memory_len=memory_len, dim=dim,
                         num_layers=num_layers, num_heads=num_heads,
                         n_observations=n_observations, n_actions=n_actions)

    x = jax.random.normal(xkey, (seq, n_observations), jnp.float32)

    # first step: no hidden state
    Q, hidden = memory_transformer_q(x, params, hidden_state=None)
    jax.block_until_ready((Q, hidden))
    assert Q.shape == (seq, n_actions)
    assert hidden.shape == (num_layers, memory_len, dim)

    # second step: recurrent hidden-state path
    Q2, hidden2 = memory_transformer_q(x, params, hidden_state=hidden)
    jax.block_until_ready((Q2, hidden2))
    assert Q2.shape == (seq, n_actions)
    assert hidden2.shape == (num_layers, memory_len, dim)

    print("KERNEL_OK")
</pallas_src>

<mosaic_0001>
module attributes {stable_mosaic.version = 11 : i64} {
  func.func @kernel(%arg0: memref<8x128xf32, #tpu.memory_space<vmem>>, %arg1: memref<2x8x128xf32, #tpu.memory_space<vmem>>, %arg2: memref<2x128x768xbf16, #tpu.memory_space<vmem>>, %arg3: memref<3x16x128xf32, #tpu.memory_space<vmem>>, %arg4: memref<128x256xbf16, #tpu.memory_space<vmem>>, %arg5: memref<8x128xf32, #tpu.memory_space<vmem>>, %arg6: memref<2x8x128xf32, #tpu.memory_space<vmem>>, %arg7: memref<16x128xf32, #tpu.memory_space<vmem>>) attributes {dimension_semantics = [], scalar_prefetch = 0 : i64, scratch_operands = 1 : i64, tpu.core_type = #tpu.core_type<tc>} {
    %0 = tpu.iota {dimensions = array<i32: 0>} : vector<32x128xi32>
    %1 = tpu.iota {dimensions = array<i32: 1>} : vector<32x128xi32>
    %cst = arith.constant 0.000000e+00 : f32
    %2 = vector.broadcast %cst : f32 to vector<32x128xf32>
    %c0_i32 = arith.constant 0 : i32
    %3 = vector.broadcast %c0_i32 : i32 to vector<32x128xi32>
    %4 = arith.cmpi sge, %0, %3 : vector<32x128xi32>
    %c8_i32 = arith.constant 8 : i32
    %5 = vector.broadcast %c8_i32 : i32 to vector<32x128xi32>
    %6 = arith.cmpi slt, %0, %5 : vector<32x128xi32>
    %7 = arith.andi %4, %6 : vector<32x128xi1>
    %c0_i32_0 = arith.constant 0 : i32
    %8 = vector.broadcast %c0_i32_0 : i32 to vector<32x128xi32>
    %9 = arith.cmpi sge, %1, %8 : vector<32x128xi32>
    %10 = arith.andi %7, %9 : vector<32x128xi1>
    %c8_i32_1 = arith.constant 8 : i32
    %11 = vector.broadcast %c8_i32_1 : i32 to vector<32x128xi32>
    %12 = arith.cmpi slt, %1, %11 : vector<32x128xi32>
    %13 = arith.andi %10, %12 : vector<32x128xi1>
    %cst_2 = arith.constant 1.000000e+00 : f32
    %14 = vector.broadcast %cst_2 : f32 to vector<32x128xf32>
    %15 = arith.select %13, %14, %2 : vector<32x128xi1>, vector<32x128xf32>
    %c8_i32_3 = arith.constant 8 : i32
    %16 = vector.broadcast %c8_i32_3 : i32 to vector<32x128xi32>
    %17 = arith.cmpi sge, %0, %16 : vector<32x128xi32>
    %c16_i32 = arith.constant 16 : i32
    %18 = vector.broadcast %c16_i32 : i32 to vector<32x128xi32>
    %19 = arith.cmpi slt, %0, %18 : vector<32x128xi32>
    %20 = arith.andi %17, %19 : vector<32x128xi1>
    %c8_i32_4 = arith.constant 8 : i32
    %21 = vector.broadcast %c8_i32_4 : i32 to vector<32x128xi32>
    %22 = arith.cmpi sge, %1, %21 : vector<32x128xi32>
    %23 = arith.andi %20, %22 : vector<32x128xi1>
    %c16_i32_5 = arith.constant 16 : i32
    %24 = vector.broadcast %c16_i32_5 : i32 to vector<32x128xi32>
    %25 = arith.cmpi slt, %1, %24 : vector<32x128xi32>
    %26 = arith.andi %23, %25 : vector<32x128xi1>
    %cst_6 = arith.constant 1.000000e+00 : f32
    %27 = vector.broadcast %cst_6 : f32 to vector<32x128xf32>
    %28 = arith.select %26, %27, %15 : vector<32x128xi1>, vector<32x128xf32>
    %c16_i32_7 = arith.constant 16 : i32
    %29 = vector.broadcast %c16_i32_7 : i32 to vector<32x128xi32>
    %30 = arith.cmpi sge, %0, %29 : vector<32x128xi32>
    %c24_i32 = arith.constant 24 : i32
    %31 = vector.broadcast %c24_i32 : i32 to vector<32x128xi32>
    %32 = arith.cmpi slt, %0, %31 : vector<32x128xi32>
    %33 = arith.andi %30, %32 : vector<32x128xi1>
    %c16_i32_8 = arith.constant 16 : i32
    %34 = vector.broadcast %c16_i32_8 : i32 to vector<32x128xi32>
    %35 = arith.cmpi sge, %1, %34 : vector<32x128xi32>
    %36 = arith.andi %33, %35 : vector<32x128xi1>
    %c24_i32_9 = arith.constant 24 : i32
    %37 = vector.broadcast %c24_i32_9 : i32 to vector<32x128xi32>
    %38 = arith.cmpi slt, %1, %37 : vector<32x128xi32>
    %39 = arith.andi %36, %38 : vector<32x128xi1>
    %cst_10 = arith.constant 1.000000e+00 : f32
    %40 = vector.broadcast %cst_10 : f32 to vector<32x128xf32>
    %41 = arith.select %39, %40, %28 : vector<32x128xi1>, vector<32x128xf32>
    %c24_i32_11 = arith.constant 24 : i32
    %42 = vector.broadcast %c24_i32_11 : i32 to vector<32x128xi32>
    %43 = arith.cmpi sge, %0, %42 : vector<32x128xi32>
    %c32_i32 = arith.constant 32 : i32
    %44 = vector.broadcast %c32_i32 : i32 to vector<32x128xi32>
    %45 = arith.cmpi slt, %0, %44 : vector<32x128xi32>
    %46 = arith.andi %43, %45 : vector<32x128xi1>
    %c24_i32_12 = arith.constant 24 : i32
    %47 = vector.broadcast %c24_i32_12 : i32 to vector<32x128xi32>
    %48 = arith.cmpi sge, %1, %47 : vector<32x128xi32>
    %49 = arith.andi %46, %48 : vector<32x128xi1>
    %c32_i32_13 = arith.constant 32 : i32
    %50 = vector.broadcast %c32_i32_13 : i32 to vector<32x128xi32>
    %51 = arith.cmpi slt, %1, %50 : vector<32x128xi32>
    %52 = arith.andi %49, %51 : vector<32x128xi1>
    %cst_14 = arith.constant 1.000000e+00 : f32
    %53 = vector.broadcast %cst_14 : f32 to vector<32x128xf32>
    %54 = arith.select %52, %53, %41 : vector<32x128xi1>, vector<32x128xf32>
    %c2 = arith.constant 2 : index
    %c0 = arith.constant 0 : index
    %c0_15 = arith.constant 0 : index
    %55 = vector.load %arg3[%c2, %c0, %c0_15] : memref<3x16x128xf32, #tpu.memory_space<vmem>>, vector<1x16x128xf32>
    %56 = vector.shape_cast %55 : vector<1x16x128xf32> to vector<16x128xf32>
    %c0_16 = arith.constant 0 : index
    %c0_17 = arith.constant 0 : index
    %57 = vector.load %arg0[%c0_16, %c0_17] : memref<8x128xf32, #tpu.memory_space<vmem>>, vector<8x128xf32>
    %58 = arith.truncf %57 : vector<8x128xf32> to vector<8x128xbf16>
    %c0_18 = arith.constant 0 : index
    %c0_19 = arith.constant 0 : index
    %59 = vector.load %arg4[%c0_18, %c0_19] : memref<128x256xbf16, #tpu.memory_space<vmem>>, vector<128x128xbf16>
    %cst_20 = arith.constant dense<0.000000e+00> : vector<8x128xf32>
    %60 = tpu.matmul %58, %59, %cst_20 {dimension_numbers = #tpu.dot_dimension_numbers<[1], [0], [0], [1], [0, 0, 1, 1], [], []>} : vector<8x128xbf16>, vector<128x128xbf16>, vector<8x128xf32> -> vector<8x128xf32>
    %61 = vector.extract_strided_slice %56 {offsets = [0, 0], sizes = [1, 128], strides = [1, 1]} : vector<16x128xf32> to vector<1x128xf32>
    %62 = vector.broadcast %61 : vector<1x128xf32> to vector<8x128xf32>
    %63 = arith.addf %60, %62 : vector<8x128xf32>
    %c0_21 = arith.constant 0 : index
    %c0_22 = arith.constant 0 : index
    %c0_23 = arith.constant 0 : index
    %64 = vector.load %arg2[%c0_21, %c0_22, %c0_23] : memref<2x128x768xbf16, #tpu.memory_space<vmem>>, vector<1x128x768xbf16>
    %65 = vector.shape_cast %64 : vector<1x128x768xbf16> to vector<128x768xbf16>
    %c0_24 = arith.constant 0 : index
    %c0_25 = arith.constant 0 : index
    %c0_26 = arith.constant 0 : index
    %66 = vector.load %arg3[%c0_24, %c0_25, %c0_26] : memref<3x16x128xf32, #tpu.memory_space<vmem>>, vector<1x16x128xf32>
    %67 = vector.shape_cast %66 : vector<1x16x128xf32> to vector<16x128xf32>
    %c0_27 = arith.constant 0 : index
    %c0_28 = arith.constant 0 : index
    %c0_29 = arith.constant 0 : index
    %68 = vector.load %arg1[%c0_27, %c0_28, %c0_29] : memref<2x8x128xf32, #tpu.memory_space<vmem>>, vector<1x8x128xf32>
    %69 = vector.shape_cast %68 : vector<1x8x128xf32> to vector<8x128xf32>
    %70 = vector.extract_strided_slice %67 {offsets = [0, 0], sizes = [1, 128], strides = [1, 1]} : vector<16x128xf32> to vector<1x128xf32>
    %71 = vector.extract_strided_slice %67 {offsets = [1, 0], sizes = [1, 128], strides = [1, 1]} : vector<16x128xf32> to vector<1x128xf32>
    %cst_30 = arith.constant dense<0.000000e+00> : vector<8xf32>
    %72 = vector.multi_reduction <add>, %63, %cst_30 [1] : vector<8x128xf32> to vector<8xf32>
    %73 = vector.shape_cast %72 : vector<8xf32> to vector<8x1xf32>
    %cst_31 = arith.constant 3.125000e-02 : f32
    %74 = vector.broadcast %cst_31 : f32 to vector<8x1xf32>
    %75 = arith.mulf %73, %74 : vector<8x1xf32>
    %76 = arith.mulf %63, %63 : vector<8x128xf32>
    %cst_32 = arith.constant dense<0.000000e+00> : vector<8xf32>
    %77 = vector.multi_reduction <add>, %76, %cst_32 [1] : vector<8x128xf32> to vector<8xf32>
    %78 = vector.shape_cast %77 : vector<8xf32> to vector<8x1xf32>
    %cst_33 = arith.constant 3.125000e-02 : f32
    %79 = vector.broadcast %cst_33 : f32 to vector<8x1xf32>
    %80 = arith.mulf %78, %79 : vector<8x1xf32>
    %81 = arith.mulf %75, %75 : vector<8x1xf32>
    %82 = arith.subf %80, %81 : vector<8x1xf32>
    %83 = vector.broadcast %75 : vector<8x1xf32> to vector<8x128xf32>
    %84 = arith.subf %63, %83 : vector<8x128xf32>
    %cst_34 = arith.constant 9.99999974E-6 : f32
    %85 = vector.broadcast %cst_34 : f32 to vector<8x1xf32>
    %86 = arith.addf %82, %85 : vector<8x1xf32>
    %87 = math.rsqrt %86 : vector<8x1xf32>
    %88 = vector.broadcast %87 : vector<8x1xf32> to vector<8x128xf32>
    %89 = arith.mulf %84, %88 : vector<8x128xf32>
    %90 = vector.broadcast %70 : vector<1x128xf32> to vector<8x128xf32>
    %91 = arith.mulf %89, %90 : vector<8x128xf32>
    %92 = vector.broadcast %71 : vector<1x128xf32> to vector<8x128xf32>
    %93 = arith.addf %91, %92 : vector<8x128xf32>
    %c0_35 = arith.constant 0 : index
    %c0_36 = arith.constant 0 : index
    %94 = vector.load %arg7[%c0_35, %c0_36] : memref<16x128xf32, #tpu.memory_space<vmem>>, vector<8x128xf32>
    tpu.vector_store %arg7[%c0_35, %c0_36], %69 {strides = array<i32>} : memref<16x128xf32, #tpu.memory_space<vmem>>, vector<8x128xf32>,
    %c8 = arith.constant 8 : index
    %c0_37 = arith.constant 0 : index
    %95 = vector.load %arg7[%c8, %c0_37] : memref<16x128xf32, #tpu.memory_space<vmem>>, vector<8x128xf32>
    tpu.vector_store %arg7[%c8, %c0_37], %93 {strides = array<i32>} : memref<16x128xf32, #tpu.memory_space<vmem>>, vector<8x128xf32>,
    %c0_38 = arith.constant 0 : index
    %c0_39 = arith.constant 0 : index
    %96 = vector.load %arg7[%c0_38, %c0_39] : memref<16x128xf32, #tpu.memory_space<vmem>>, vector<16x128xf32>
    %97 = arith.truncf %96 : vector<16x128xf32> to vector<16x128xbf16>
    %98 = vector.extract_strided_slice %65 {offsets = [0, 0], sizes = [128, 384], strides = [1, 1]} : vector<128x768xbf16> to vector<128x384xbf16>
    %cst_40 = arith.constant dense<0.000000e+00> : vector<16x384xf32>
    %99 = tpu.matmul %97, %98, %cst_40 {dimension_numbers = #tpu.dot_dimension_numbers<[1], [0], [0], [1], [0, 0, 1, 1], [], []>} : vector<16x128xbf16>, vector<128x384xbf16>, vector<16x384xf32> -> vector<16x384xf32>
    %100 = vector.extract_strided_slice %99 {offsets = [8, 0], sizes = [8, 128], strides = [1, 1]} : vector<16x384xf32> to vector<8x128xf32>
    %101 = vector.extract_strided_slice %67 {offsets = [6, 0], sizes = [1, 128], strides = [1, 1]} : vector<16x128xf32> to vector<1x128xf32>
    %102 = vector.broadcast %101 : vector<1x128xf32> to vector<8x128xf32>
    %103 = arith.addf %100, %102 : vector<8x128xf32>
    %104 = vector.extract_strided_slice %99 {offsets = [0, 128], sizes = [16, 128], strides = [1, 1]} : vector<16x384xf32> to vector<16x128xf32>
    %105 = vector.extract_strided_slice %67 {offsets = [7, 0], sizes = [1, 128], strides = [1, 1]} : vector<16x128xf32> to vector<1x128xf32>
    %106 = vector.broadcast %105 : vector<1x128xf32> to vector<16x128xf32>
    %107 = arith.addf %104, %106 : vector<16x128xf32>
    %108 = arith.truncf %107 : vector<16x128xf32> to vector<16x128xbf16>
    %109 = vector.extract_strided_slice %99 {offsets = [0, 256], sizes = [16, 128], strides = [1, 1]} : vector<16x384xf32> to vector<16x128xf32>
    %110 = vector.extract_strided_slice %67 {offsets = [8, 0], sizes = [1, 128], strides = [1, 1]} : vector<16x128xf32> to vector<1x128xf32>
    %111 = vector.broadcast %110 : vector<1x128xf32> to vector<16x128xf32>
    %112 = arith.addf %109, %111 : vector<16x128xf32>
    %113 = arith.truncf %112 : vector<16x128xf32> to vector<16x128xbf16>
    %114 = tpu.concatenate %103, %103, %103, %103 in 0 : vector<8x128xf32>, vector<8x128xf32>, vector<8x128xf32>, vector<8x128xf32> -> vector<32x128xf32>
    %115 = arith.mulf %114, %54 : vector<32x128xf32>
    %116 = arith.truncf %115 : vector<32x128xf32> to vector<32x128xbf16>
    %cst_41 = arith.constant dense<0.000000e+00> : vector<32x16xf32>
    %117 = tpu.matmul %116, %108, %cst_41 {dimension_numbers = #tpu.dot_dimension_numbers<[1], [1], [0], [0], [0, 0, 1, 0], [], []>} : vector<32x128xbf16>, vector<16x128xbf16>, vector<32x16xf32> -> vector<32x16xf32>
    %cst_42 = arith.constant 0.353553385 : f32
    %118 = vector.broadcast %cst_42 : f32 to vector<32x16xf32>
    %119 = arith.mulf %117, %118 : vector<32x16xf32>
    %cst_43 = arith.constant dense<0xFF800000> : vector<32xf32>
    %120 = vector.multi_reduction <maximumf>, %119, %cst_43 [1] : vector<32x16xf32> to vector<32xf32>
    %121 = vector.shape_cast %120 : vector<32xf32> to vector<32x1xf32>
    %122 = vector.broadcast %121 : vector<32x1xf32> to vector<32x16xf32>
    %123 = arith.subf %119, %122 : vector<32x16xf32>
    %124 = math.exp %123 : vector<32x16xf32>
    %cst_44 = arith.constant dense<0.000000e+00> : vector<32xf32>
    %125 = vector.multi_reduction <add>, %124, %cst_44 [1] : vector<32x16xf32> to vector<32xf32>
    %126 = vector.shape_cast %125 : vector<32xf32> to vector<32x1xf32>
    %127 = tpu.reciprocal %126 {approx = true} : vector<32x1xf32> -> vector<32x1xf32>
    %128 = vector.broadcast %127 : vector<32x1xf32> to vector<32x16xf32>
    %129 = arith.mulf %124, %128 : vector<32x16xf32>
    %130 = arith.truncf %129 : vector<32x16xf32> to vector<32x16xbf16>
    %cst_45 = arith.constant dense<0.000000e+00> : vector<32x128xf32>
    %131 = tpu.matmul %130, %113, %cst_45 {dimension_numbers = #tpu.dot_dimension_numbers<[1], [0], [0], [1], [0, 0, 1, 1], [], []>} : vector<32x16xbf16>, vector<16x128xbf16>, vector<32x128xf32> -> vector<32x128xf32>
    %132 = arith.mulf %131, %54 : vector<32x128xf32>
    %133 = vector.extract_strided_slice %132 {offsets = [0, 0], sizes = [8, 128], strides = [1, 1]} : vector<32x128xf32> to vector<8x128xf32>
    %134 = vector.extract_strided_slice %132 {offsets = [8, 0], sizes = [8, 128], strides = [1, 1]} : vector<32x128xf32> to vector<8x128xf32>
    %135 = arith.addf %133, %134 : vector<8x128xf32>
    %136 = vector.extract_strided_slice %132 {offsets = [16, 0], sizes = [8, 128], strides = [1, 1]} : vector<32x128xf32> to vector<8x128xf32>
    %137 = arith.addf %135, %136 : vector<8x128xf32>
    %138 = vector.extract_strided_slice %132 {offsets = [24, 0], sizes = [8, 128], strides = [1, 1]} : vector<32x128xf32> to vector<8x128xf32>
    %139 = arith.addf %137, %138 : vector<8x128xf32>
    %140 = arith.truncf %139 : vector<8x128xf32> to vector<8x128xbf16>
    %141 = vector.extract_strided_slice %65 {offsets = [0, 384], sizes = [128, 128], strides = [1, 1]} : vector<128x768xbf16> to vector<128x128xbf16>
    %cst_46 = arith.constant dense<0.000000e+00> : vector<8x128xf32>
    %142 = tpu.matmul %140, %141, %cst_46 {dimension_numbers = #tpu.dot_dimension_numbers<[1], [0], [0], [1], [0, 0, 1, 1], [], []>} : vector<8x128xbf16>, vector<128x128xbf16>, vector<8x128xf32> -> vector<8x128xf32>
    %143 = vector.extract_strided_slice %67 {offsets = [4, 0], sizes = [1, 128], strides = [1, 1]} : vector<16x128xf32> to vector<1x128xf32>
    %144 = vector.broadcast %143 : vector<1x128xf32> to vector<8x128xf32>
    %145 = arith.addf %142, %144 : vector<8x128xf32>
    %146 = arith.addf %63, %145 : vector<8x128xf32>
    %147 = vector.extract_strided_slice %67 {offsets = [2, 0], sizes = [1, 128], strides = [1, 1]} : vector<16x128xf32> to vector<1x128xf32>
    %148 = vector.extract_strided_slice %67 {offsets = [3, 0], sizes = [1, 128], strides = [1, 1]} : vector<16x128xf32> to vector<1x128xf32>
    %cst_47 = arith.constant dense<0.000000e+00> : vector<8xf32>
    %149 = vector.multi_reduction <add>, %146, %cst_47 [1] : vector<8x128xf32> to vector<8xf32>
    %150 = vector.shape_cast %149 : vector<8xf32> to vector<8x1xf32>
    %cst_48 = arith.constant 3.125000e-02 : f32
    %151 = vector.broadcast %cst_48 : f32 to vector<8x1xf32>
    %152 = arith.mulf %150, %151 : vector<8x1xf32>
    %153 = arith.mulf %146, %146 : vector<8x128xf32>
    %cst_49 = arith.constant dense<0.000000e+00> : vector<8xf32>
    %154 = vector.multi_reduction <add>, %153, %cst_49 [1] : vector<8x128xf32> to vector<8xf32>
    %155 = vector.shape_cast %154 : vector<8xf32> to vector<8x1xf32>
    %cst_50 = arith.constant 3.125000e-02 : f32
    %156 = vector.broadcast %cst_50 : f32 to vector<8x1xf32>
    %157 = arith.mulf %155, %156 : vector<8x1xf32>
    %158 = arith.mulf %152, %152 : vector<8x1xf32>
    %159 = arith.subf %157, %158 : vector<8x1xf32>
    %160 = vector.broadcast %152 : vector<8x1xf32> to vector<8x128xf32>
    %161 = arith.subf %146, %160 : vector<8x128xf32>
    %cst_51 = arith.constant 9.99999974E-6 : f32
    %162 = vector.broadcast %cst_51 : f32 to vector<8x1xf32>
    %163 = arith.addf %159, %162 : vector<8x1xf32>
    %164 = math.rsqrt %163 : vector<8x1xf32>
    %165 = vector.broadcast %164 : vector<8x1xf32> to vector<8x128xf32>
    %166 = arith.mulf %161, %165 : vector<8x128xf32>
    %167 = vector.broadcast %147 : vector<1x128xf32> to vector<8x128xf32>
    %168 = arith.mulf %166, %167 : vector<8x128xf32>
    %169 = vector.broadcast %148 : vector<1x128xf32> to vector<8x128xf32>
    %170 = arith.addf %168, %169 : vector<8x128xf32>
    %171 = arith.truncf %170 : vector<8x128xf32> to vector<8x128xbf16>
    %172 = vector.extract_strided_slice %65 {offsets = [0, 512], sizes = [128, 128], strides = [1, 1]} : vector<128x768xbf16> to vector<128x128xbf16>
    %cst_52 = arith.constant dense<0.000000e+00> : vector<8x128xf32>
    %173 = tpu.matmul %171, %172, %cst_52 {dimension_numbers = #tpu.dot_dimension_numbers<[1], [0], [0], [1], [0, 0, 1, 1], [], []>} : vector<8x128xbf16>, vector<128x128xbf16>, vector<8x128xf32> -> vector<8x128xf32>
    %174 = vector.extract_strided_slice %67 {offsets = [9, 0], sizes = [1, 128], strides = [1, 1]} : vector<16x128xf32> to vector<1x128xf32>
    %175 = vector.broadcast %174 : vector<1x128xf32> to vector<8x128xf32>
    %176 = arith.addf %173, %175 : vector<8x128xf32>
    %177 = arith.mulf %176, %176 : vector<8x128xf32>
    %178 = arith.mulf %176, %177 : vector<8x128xf32>
    %cst_53 = arith.constant 4.471500e-02 : f32
    %179 = vector.broadcast %cst_53 : f32 to vector<8x128xf32>
    %180 = arith.mulf %179, %178 : vector<8x128xf32>
    %181 = arith.addf %176, %180 : vector<8x128xf32>
    %cst_54 = arith.constant 0.797884583 : f32
    %182 = vector.broadcast %cst_54 : f32 to vector<8x128xf32>
    %183 = arith.mulf %182, %181 : vector<8x128xf32>
    %184 = math.tanh %183 : vector<8x128xf32>
    %cst_55 = arith.constant 1.000000e+00 : f32
    %185 = vector.broadcast %cst_55 : f32 to vector<8x128xf32>
    %186 = arith.addf %185, %184 : vector<8x128xf32>
    %cst_56 = arith.constant 5.000000e-01 : f32
    %187 = vector.broadcast %cst_56 : f32 to vector<8x128xf32>
    %188 = arith.mulf %187, %186 : vector<8x128xf32>
    %189 = arith.mulf %176, %188 : vector<8x128xf32>
    %190 = arith.truncf %189 : vector<8x128xf32> to vector<8x128xbf16>
    %191 = vector.extract_strided_slice %65 {offsets = [0, 640], sizes = [128, 128], strides = [1, 1]} : vector<128x768xbf16> to vector<128x128xbf16>
    %cst_57 = arith.constant dense<0.000000e+00> : vector<8x128xf32>
    %192 = tpu.matmul %190, %191, %cst_57 {dimension_numbers = #tpu.dot_dimension_numbers<[1], [0], [0], [1], [0, 0, 1, 1], [], []>} : vector<8x128xbf16>, vector<128x128xbf16>, vector<8x128xf32> -> vector<8x128xf32>
    %193 = vector.extract_strided_slice %67 {offsets = [5, 0], sizes = [1, 128], strides = [1, 1]} : vector<16x128xf32> to vector<1x128xf32>
    %194 = vector.broadcast %193 : vector<1x128xf32> to vector<8x128xf32>
    %195 = arith.addf %192, %194 : vector<8x128xf32>
    %196 = arith.addf %146, %195 : vector<8x128xf32>
    %c0_58 = arith.constant 0 : index
    %c0_59 = arith.constant 0 : index
    %c0_60 = arith.constant 0 : index
    %197 = vector.load %arg6[%c0_58, %c0_59, %c0_60] : memref<2x8x128xf32, #tpu.memory_space<vmem>>, vector<1x8x128xf32>
    %198 = vector.shape_cast %197 : vector<1x8x128xf32> to vector<8x128xf32>
    %199 = vector.shape_cast %196 : vector<8x128xf32> to vector<1x8x128xf32>
    tpu.vector_store %arg6[%c0_58, %c0_59, %c0_60], %199 {strides = array<i32>} : memref<2x8x128xf32, #tpu.memory_space<vmem>>, vector<1x8x128xf32>,
    %c1 = arith.constant 1 : index
    %c0_61 = arith.constant 0 : index
    %c0_62 = arith.constant 0 : index
    %200 = vector.load %arg2[%c1, %c0_61, %c0_62] : memref<2x128x768xbf16, #tpu.memory_space<vmem>>, vector<1x128x768xbf16>
    %201 = vector.shape_cast %200 : vector<1x128x768xbf16> to vector<128x768xbf16>
    %c1_63 = arith.constant 1 : index
    %c0_64 = arith.constant 0 : index
    %c0_65 = arith.constant 0 : index
    %202 = vector.load %arg3[%c1_63, %c0_64, %c0_65] : memref<3x16x128xf32, #tpu.memory_space<vmem>>, vector<1x16x128xf32>
    %203 = vector.shape_cast %202 : vector<1x16x128xf32> to vector<16x128xf32>
    %c1_66 = arith.constant 1 : index
    %c0_67 = arith.constant 0 : index
    %c0_68 = arith.constant 0 : index
    %204 = vector.load %arg1[%c1_66, %c0_67, %c0_68] : memref<2x8x128xf32, #tpu.memory_space<vmem>>, vector<1x8x128xf32>
    %205 = vector.shape_cast %204 : vector<1x8x128xf32> to vector<8x128xf32>
    %206 = vector.extract_strided_slice %203 {offsets = [0, 0], sizes = [1, 128], strides = [1, 1]} : vector<16x128xf32> to vector<1x128xf32>
    %207 = vector.extract_strided_slice %203 {offsets = [1, 0], sizes = [1, 128], strides = [1, 1]} : vector<16x128xf32> to vector<1x128xf32>
    %cst_69 = arith.constant dense<0.000000e+00> : vector<8xf32>
    %208 = vector.multi_reduction <add>, %196, %cst_69 [1] : vector<8x128xf32> to vector<8xf32>
    %209 = vector.shape_cast %208 : vector<8xf32> to vector<8x1xf32>
    %cst_70 = arith.constant 3.125000e-02 : f32
    %210 = vector.broadcast %cst_70 : f32 to vector<8x1xf32>
    %211 = arith.mulf %209, %210 : vector<8x1xf32>
    %212 = arith.mulf %196, %196 : vector<8x128xf32>
    %cst_71 = arith.constant dense<0.000000e+00> : vector<8xf32>
    %213 = vector.multi_reduction <add>, %212, %cst_71 [1] : vector<8x128xf32> to vector<8xf32>
    %214 = vector.shape_cast %213 : vector<8xf32> to vector<8x1xf32>
    %cst_72 = arith.constant 3.125000e-02 : f32
    %215 = vector.broadcast %cst_72 : f32 to vector<8x1xf32>
    %216 = arith.mulf %214, %215 : vector<8x1xf32>
    %217 = arith.mulf %211, %211 : vector<8x1xf32>
    %218 = arith.subf %216, %217 : vector<8x1xf32>
    %219 = vector.broadcast %211 : vector<8x1xf32> to vector<8x128xf32>
    %220 = arith.subf %196, %219 : vector<8x128xf32>
    %cst_73 = arith.constant 9.99999974E-6 : f32
    %221 = vector.broadcast %cst_73 : f32 to vector<8x1xf32>
    %222 = arith.addf %218, %221 : vector<8x1xf32>
    %223 = math.rsqrt %222 : vector<8x1xf32>
    %224 = vector.broadcast %223 : vector<8x1xf32> to vector<8x128xf32>
    %225 = arith.mulf %220, %224 : vector<8x128xf32>
    %226 = vector.broadcast %206 : vector<1x128xf32> to vector<8x128xf32>
    %227 = arith.mulf %225, %226 : vector<8x128xf32>
    %228 = vector.broadcast %207 : vector<1x128xf32> to vector<8x128xf32>
    %229 = arith.addf %227, %228 : vector<8x128xf32>
    %c0_74 = arith.constant 0 : index
    %c0_75 = arith.constant 0 : index
    %230 = vector.load %arg7[%c0_74, %c0_75] : memref<16x128xf32, #tpu.memory_space<vmem>>, vector<8x128xf32>
    tpu.vector_store %arg7[%c0_74, %c0_75], %205 {strides = array<i32>} : memref<16x128xf32, #tpu.memory_space<vmem>>, vector<8x128xf32>,
    %c8_76 = arith.constant 8 : index
    %c0_77 = arith.constant 0 : index
    %231 = vector.load %arg7[%c8_76, %c0_77] : memref<16x128xf32, #tpu.memory_space<vmem>>, vector<8x128xf32>
    tpu.vector_store %arg7[%c8_76, %c0_77], %229 {strides = array<i32>} : memref<16x128xf32, #tpu.memory_space<vmem>>, vector<8x128xf32>,
    %c0_78 = arith.constant 0 : index
    %c0_79 = arith.constant 0 : index
    %232 = vector.load %arg7[%c0_78, %c0_79] : memref<16x128xf32, #tpu.memory_space<vmem>>, vector<16x128xf32>
    %233 = arith.truncf %232 : vector<16x128xf32> to vector<16x128xbf16>
    %234 = vector.extract_strided_slice %201 {offsets = [0, 0], sizes = [128, 384], strides = [1, 1]} : vector<128x768xbf16> to vector<128x384xbf16>
    %cst_80 = arith.constant dense<0.000000e+00> : vector<16x384xf32>
    %235 = tpu.matmul %233, %234, %cst_80 {dimension_numbers = #tpu.dot_dimension_numbers<[1], [0], [0], [1], [0, 0, 1, 1], [], []>} : vector<16x128xbf16>, vector<128x384xbf16>, vector<16x384xf32> -> vector<16x384xf32>
    %236 = vector.extract_strided_slice %235 {offsets = [8, 0], sizes = [8, 128], strides = [1, 1]} : vector<16x384xf32> to vector<8x128xf32>
    %237 = vector.extract_strided_slice %203 {offsets = [6, 0], sizes = [1, 128], strides = [1, 1]} : vector<16x128xf32> to vector<1x128xf32>
    %238 = vector.broadcast %237 : vector<1x128xf32> to vector<8x128xf32>
    %239 = arith.addf %236, %238 : vector<8x128xf32>
    %240 = vector.extract_strided_slice %235 {offsets = [0, 128], sizes = [16, 128], strides = [1, 1]} : vector<16x384xf32> to vector<16x128xf32>
    %241 = vector.extract_strided_slice %203 {offsets = [7, 0], sizes = [1, 128], strides = [1, 1]} : vector<16x128xf32> to vector<1x128xf32>
    %242 = vector.broadcast %241 : vector<1x128xf32> to vector<16x128xf32>
    %243 = arith.addf %240, %242 : vector<16x128xf32>
    %244 = arith.truncf %243 : vector<16x128xf32> to vector<16x128xbf16>
    %245 = vector.extract_strided_slice %235 {offsets = [0, 256], sizes = [16, 128], strides = [1, 1]} : vector<16x384xf32> to vector<16x128xf32>
    %246 = vector.extract_strided_slice %203 {offsets = [8, 0], sizes = [1, 128], strides = [1, 1]} : vector<16x128xf32> to vector<1x128xf32>
    %247 = vector.broadcast %246 : vector<1x128xf32> to vector<16x128xf32>
    %248 = arith.addf %245, %247 : vector<16x128xf32>
    %249 = arith.truncf %248 : vector<16x128xf32> to vector<16x128xbf16>
    %250 = tpu.concatenate %239, %239, %239, %239 in 0 : vector<8x128xf32>, vector<8x128xf32>, vector<8x128xf32>, vector<8x128xf32> -> vector<32x128xf32>
    %251 = arith.mulf %250, %54 : vector<32x128xf32>
    %252 = arith.truncf %251 : vector<32x128xf32> to vector<32x128xbf16>
    %cst_81 = arith.constant dense<0.000000e+00> : vector<32x16xf32>
    %253 = tpu.matmul %252, %244, %cst_81 {dimension_numbers = #tpu.dot_dimension_numbers<[1], [1], [0], [0], [0, 0, 1, 0], [], []>} : vector<32x128xbf16>, vector<16x128xbf16>, vector<32x16xf32> -> vector<32x16xf32>
    %cst_82 = arith.constant 0.353553385 : f32
    %254 = vector.broadcast %cst_82 : f32 to vector<32x16xf32>
    %255 = arith.mulf %253, %254 : vector<32x16xf32>
    %cst_83 = arith.constant dense<0xFF800000> : vector<32xf32>
    %256 = vector.multi_reduction <maximumf>, %255, %cst_83 [1] : vector<32x16xf32> to vector<32xf32>
    %257 = vector.shape_cast %256 : vector<32xf32> to vector<32x1xf32>
    %258 = vector.broadcast %257 : vector<32x1xf32> to vector<32x16xf32>
    %259 = arith.subf %255, %258 : vector<32x16xf32>
    %260 = math.exp %259 : vector<32x16xf32>
    %cst_84 = arith.constant dense<0.000000e+00> : vector<32xf32>
    %261 = vector.multi_reduction <add>, %260, %cst_84 [1] : vector<32x16xf32> to vector<32xf32>
    %262 = vector.shape_cast %261 : vector<32xf32> to vector<32x1xf32>
    %263 = tpu.reciprocal %262 {approx = true} : vector<32x1xf32> -> vector<32x1xf32>
    %264 = vector.broadcast %263 : vector<32x1xf32> to vector<32x16xf32>
    %265 = arith.mulf %260, %264 : vector<32x16xf32>
    %266 = arith.truncf %265 : vector<32x16xf32> to vector<32x16xbf16>
    %cst_85 = arith.constant dense<0.000000e+00> : vector<32x128xf32>
    %267 = tpu.matmul %266, %249, %cst_85 {dimension_numbers = #tpu.dot_dimension_numbers<[1], [0], [0], [1], [0, 0, 1, 1], [], []>} : vector<32x16xbf16>, vector<16x128xbf16>, vector<32x128xf32> -> vector<32x128xf32>
    %268 = arith.mulf %267, %54 : vector<32x128xf32>
    %269 = vector.extract_strided_slice %268 {offsets = [0, 0], sizes = [8, 128], strides = [1, 1]} : vector<32x128xf32> to vector<8x128xf32>
    %270 = vector.extract_strided_slice %268 {offsets = [8, 0], sizes = [8, 128], strides = [1, 1]} : vector<32x128xf32> to vector<8x128xf32>
    %271 = arith.addf %269, %270 : vector<8x128xf32>
    %272 = vector.extract_strided_slice %268 {offsets = [16, 0], sizes = [8, 128], strides = [1, 1]} : vector<32x128xf32> to vector<8x128xf32>
    %273 = arith.addf %271, %272 : vector<8x128xf32>
    %274 = vector.extract_strided_slice %268 {offsets = [24, 0], sizes = [8, 128], strides = [1, 1]} : vector<32x128xf32> to vector<8x128xf32>
    %275 = arith.addf %273, %274 : vector<8x128xf32>
    %276 = arith.truncf %275 : vector<8x128xf32> to vector<8x128xbf16>
    %277 = vector.extract_strided_slice %201 {offsets = [0, 384], sizes = [128, 128], strides = [1, 1]} : vector<128x768xbf16> to vector<128x128xbf16>
    %cst_86 = arith.constant dense<0.000000e+00> : vector<8x128xf32>
    %278 = tpu.matmul %276, %277, %cst_86 {dimension_numbers = #tpu.dot_dimension_numbers<[1], [0], [0], [1], [0, 0, 1, 1], [], []>} : vector<8x128xbf16>, vector<128x128xbf16>, vector<8x128xf32> -> vector<8x128xf32>
    %279 = vector.extract_strided_slice %203 {offsets = [4, 0], sizes = [1, 128], strides = [1, 1]} : vector<16x128xf32> to vector<1x128xf32>
    %280 = vector.broadcast %279 : vector<1x128xf32> to vector<8x128xf32>
    %281 = arith.addf %278, %280 : vector<8x128xf32>
    %282 = arith.addf %196, %281 : vector<8x128xf32>
    %283 = vector.extract_strided_slice %203 {offsets = [2, 0], sizes = [1, 128], strides = [1, 1]} : vector<16x128xf32> to vector<1x128xf32>
    %284 = vector.extract_strided_slice %203 {offsets = [3, 0], sizes = [1, 128], strides = [1, 1]} : vector<16x128xf32> to vector<1x128xf32>
    %cst_87 = arith.constant dense<0.000000e+00> : vector<8xf32>
    %285 = vector.multi_reduction <add>, %282, %cst_87 [1] : vector<8x128xf32> to vector<8xf32>
    %286 = vector.shape_cast %285 : vector<8xf32> to vector<8x1xf32>
    %cst_88 = arith.constant 3.125000e-02 : f32
    %287 = vector.broadcast %cst_88 : f32 to vector<8x1xf32>
    %288 = arith.mulf %286, %287 : vector<8x1xf32>
    %289 = arith.mulf %282, %282 : vector<8x128xf32>
    %cst_89 = arith.constant dense<0.000000e+00> : vector<8xf32>
    %290 = vector.multi_reduction <add>, %289, %cst_89 [1] : vector<8x128xf32> to vector<8xf32>
    %291 = vector.shape_cast %290 : vector<8xf32> to vector<8x1xf32>
    %cst_90 = arith.constant 3.125000e-02 : f32
    %292 = vector.broadcast %cst_90 : f32 to vector<8x1xf32>
    %293 = arith.mulf %291, %292 : vector<8x1xf32>
    %294 = arith.mulf %288, %288 : vector<8x1xf32>
    %295 = arith.subf %293, %294 : vector<8x1xf32>
    %296 = vector.broadcast %288 : vector<8x1xf32> to vector<8x128xf32>
    %297 = arith.subf %282, %296 : vector<8x128xf32>
    %cst_91 = arith.constant 9.99999974E-6 : f32
    %298 = vector.broadcast %cst_91 : f32 to vector<8x1xf32>
    %299 = arith.addf %295, %298 : vector<8x1xf32>
    %300 = math.rsqrt %299 : vector<8x1xf32>
    %301 = vector.broadcast %300 : vector<8x1xf32> to vector<8x128xf32>
    %302 = arith.mulf %297, %301 : vector<8x128xf32>
    %303 = vector.broadcast %283 : vector<1x128xf32> to vector<8x128xf32>
    %304 = arith.mulf %302, %303 : vector<8x128xf32>
    %305 = vector.broadcast %284 : vector<1x128xf32> to vector<8x128xf32>
    %306 = arith.addf %304, %305 : vector<8x128xf32>
    %307 = arith.truncf %306 : vector<8x128xf32> to vector<8x128xbf16>
    %308 = vector.extract_strided_slice %201 {offsets = [0, 512], sizes = [128, 128], strides = [1, 1]} : vector<128x768xbf16> to vector<128x128xbf16>
    %cst_92 = arith.constant dense<0.000000e+00> : vector<8x128xf32>
    %309 = tpu.matmul %307, %308, %cst_92 {dimension_numbers = #tpu.dot_dimension_numbers<[1], [0], [0], [1], [0, 0, 1, 1], [], []>} : vector<8x128xbf16>, vector<128x128xbf16>, vector<8x128xf32> -> vector<8x128xf32>
    %310 = vector.extract_strided_slice %203 {offsets = [9, 0], sizes = [1, 128], strides = [1, 1]} : vector<16x128xf32> to vector<1x128xf32>
    %311 = vector.broadcast %310 : vector<1x128xf32> to vector<8x128xf32>
    %312 = arith.addf %309, %311 : vector<8x128xf32>
    %313 = arith.mulf %312, %312 : vector<8x128xf32>
    %314 = arith.mulf %312, %313 : vector<8x128xf32>
    %cst_93 = arith.constant 4.471500e-02 : f32
    %315 = vector.broadcast %cst_93 : f32 to vector<8x128xf32>
    %316 = arith.mulf %315, %314 : vector<8x128xf32>
    %317 = arith.addf %312, %316 : vector<8x128xf32>
    %cst_94 = arith.constant 0.797884583 : f32
    %318 = vector.broadcast %cst_94 : f32 to vector<8x128xf32>
    %319 = arith.mulf %318, %317 : vector<8x128xf32>
    %320 = math.tanh %319 : vector<8x128xf32>
    %cst_95 = arith.constant 1.000000e+00 : f32
    %321 = vector.broadcast %cst_95 : f32 to vector<8x128xf32>
    %322 = arith.addf %321, %320 : vector<8x128xf32>
    %cst_96 = arith.constant 5.000000e-01 : f32
    %323 = vector.broadcast %cst_96 : f32 to vector<8x128xf32>
    %324 = arith.mulf %323, %322 : vector<8x128xf32>
    %325 = arith.mulf %312, %324 : vector<8x128xf32>
    %326 = arith.truncf %325 : vector<8x128xf32> to vector<8x128xbf16>
    %327 = vector.extract_strided_slice %201 {offsets = [0, 640], sizes = [128, 128], strides = [1, 1]} : vector<128x768xbf16> to vector<128x128xbf16>
    %cst_97 = arith.constant dense<0.000000e+00> : vector<8x128xf32>
    %328 = tpu.matmul %326, %327, %cst_97 {dimension_numbers = #tpu.dot_dimension_numbers<[1], [0], [0], [1], [0, 0, 1, 1], [], []>} : vector<8x128xbf16>, vector<128x128xbf16>, vector<8x128xf32> -> vector<8x128xf32>
    %329 = vector.extract_strided_slice %203 {offsets = [5, 0], sizes = [1, 128], strides = [1, 1]} : vector<16x128xf32> to vector<1x128xf32>
    %330 = vector.broadcast %329 : vector<1x128xf32> to vector<8x128xf32>
    %331 = arith.addf %328, %330 : vector<8x128xf32>
    %332 = arith.addf %282, %331 : vector<8x128xf32>
    %c1_98 = arith.constant 1 : index
    %c0_99 = arith.constant 0 : index
    %c0_100 = arith.constant 0 : index
    %333 = vector.load %arg6[%c1_98, %c0_99, %c0_100] : memref<2x8x128xf32, #tpu.memory_space<vmem>>, vector<1x8x128xf32>
    %334 = vector.shape_cast %333 : vector<1x8x128xf32> to vector<8x128xf32>
    %335 = vector.shape_cast %332 : vector<8x128xf32> to vector<1x8x128xf32>
    tpu.vector_store %arg6[%c1_98, %c0_99, %c0_100], %335 {strides = array<i32>} : memref<2x8x128xf32, #tpu.memory_space<vmem>>, vector<1x8x128xf32>,
    %336 = arith.truncf %332 : vector<8x128xf32> to vector<8x128xbf16>
    %c0_101 = arith.constant 0 : index
    %c128 = arith.constant 128 : index
    %337 = vector.load %arg4[%c0_101, %c128] : memref<128x256xbf16, #tpu.memory_space<vmem>>, vector<128x128xbf16>
    %cst_102 = arith.constant dense<0.000000e+00> : vector<8x128xf32>
    %338 = tpu.matmul %336, %337, %cst_102 {dimension_numbers = #tpu.dot_dimension_numbers<[1], [0], [0], [1], [0, 0, 1, 1], [], []>} : vector<8x128xbf16>, vector<128x128xbf16>, vector<8x128xf32> -> vector<8x128xf32>
    %339 = vector.extract_strided_slice %56 {offsets = [1, 0], sizes = [1, 128], strides = [1, 1]} : vector<16x128xf32> to vector<1x128xf32>
    %340 = vector.broadcast %339 : vector<1x128xf32> to vector<8x128xf32>
    %341 = arith.addf %338, %340 : vector<8x128xf32>
    %342 = tpu.iota {dimensions = array<i32: 1>} : vector<8x128xi32>
    %c2_i32 = arith.constant 2 : i32
    %343 = vector.broadcast %c2_i32 : i32 to vector<8x128xi32>
    %344 = arith.cmpi slt, %342, %343 : vector<8x128xi32>
    %345 = arith.extui %344 : vector<8x128xi1> to vector<8x128xi32>
    %346 = arith.sitofp %345 : vector<8x128xi32> to vector<8x128xf32>
    %c2_i32_103 = arith.constant 2 : i32
    %347 = vector.broadcast %c2_i32_103 : i32 to vector<8x128xi32>
    %348 = arith.cmpi eq, %342, %347 : vector<8x128xi32>
    %349 = arith.extui %348 : vector<8x128xi1> to vector<8x128xi32>
    %350 = arith.sitofp %349 : vector<8x128xi32> to vector<8x128xf32>
    %351 = arith.mulf %341, %346 : vector<8x128xf32>
    %cst_104 = arith.constant dense<0.000000e+00> : vector<8xf32>
    %352 = vector.multi_reduction <add>, %351, %cst_104 [1] : vector<8x128xf32> to vector<8xf32>
    %353 = vector.shape_cast %352 : vector<8xf32> to vector<8x1xf32>
    %cst_105 = arith.constant 5.000000e-01 : f32
    %354 = vector.broadcast %cst_105 : f32 to vector<8x1xf32>
    %355 = arith.mulf %353, %354 : vector<8x1xf32>
    %356 = arith.mulf %341, %350 : vector<8x128xf32>
    %cst_106 = arith.constant dense<0.000000e+00> : vector<8xf32>
    %357 = vector.multi_reduction <add>, %356, %cst_106 [1] : vector<8x128xf32> to vector<8xf32>
    %358 = vector.shape_cast %357 : vector<8xf32> to vector<8x1xf32>
    %359 = arith.subf %358, %355 : vector<8x1xf32>
    %360 = vector.broadcast %359 : vector<8x1xf32> to vector<8x128xf32>
    %361 = arith.addf %341, %360 : vector<8x128xf32>
    %c0_107 = arith.constant 0 : index
    %c0_108 = arith.constant 0 : index
    %362 = vector.load %arg5[%c0_107, %c0_108] : memref<8x128xf32, #tpu.memory_space<vmem>>, vector<8x128xf32>
    tpu.vector_store %arg5[%c0_107, %c0_108], %361 {strides = array<i32>} : memref<8x128xf32, #tpu.memory_space<vmem>>, vector<8x128xf32>,
    return
  }
}

</mosaic_0001>

<bundles_post_ra>
// kernel: tpu_custom_call.1
= control target key start
LH: loop header
LB: loop body
LE: loop exit
PB: predicated region body
PF: predicated region fallthrough
CT: control target
= control target key end

     0   :  { %12 = vsyncpa [#allocation4], 0  ;;  %s2556_s0 = inlined_call_operand.hbm [shape: f32[8,128], index: 0, kind: input, shape index: {}]   ;;  %s2557_s1 = inlined_call_operand.hbm [shape: f32[2,8,128], index: 1, kind: input, shape index: {}]   ;;  %s2558_s2 = inlined_call_operand.hbm [shape: bf16[2,128,768], index: 2, kind: input, shape index: {}]   ;;  %s2559_s3 = inlined_call_operand.hbm [shape: f32[3,16,128], index: 3, kind: input, shape index: {}]   ;;  %s2560_s4 = inlined_call_operand.hbm [shape: bf16[128,256], index: 4, kind: input, shape index: {}]   ;;  %s2561_s5 = inlined_call_operand.hbm [shape: f32[8,128], index: 5, kind: output, shape index: {0}]   ;;  %s2562_s6 = inlined_call_operand.hbm [shape: f32[2,8,128], index: 6, kind: output, shape index: {1}]  }
   0x1   :  { %13 = vsyncpa [#allocation7], 0 }
   0x2   :  { %14 = vsyncpa [#allocation10], 0 }
   0x3   :  { %15 = vsyncpa [#allocation5], 0  ;;  %s32_s23 = sshll.u32 %s2557_s1, 4  ;;  %s33_s23 = int_to_ptr.hbm [resolvable:$true] %s32_s23 }
   0x4   :  { %16 = vsyncpa [#allocation14], 0  ;;  %s2358_s24 = smov [#allocation6]   ;;  %s58_s28 = sshll.u32 %s2559_s3, 4  ;;  %s59_s28 = int_to_ptr.hbm [resolvable:$true] %s58_s28 }
   0x5   :  { %s34_s25 = sshll.u32 %s2358_s24, 4  ;;  %s2359_s29 = smov 128   ;;  %s35_s25 = int_to_ptr.vmem [resolvable:$true] %s34_s25 }
   0x6   :  { %s2360_s30 = smov 8   ;;  %s2361_s7 = smov [#allocation9]  }
   0x7   :  { %40 = dma.hbm_to_vmem [thread:$0]  %s33_s23, 256, %s35_s25, [#allocation7], %s2359_s29, %s2359_s29, %s2360_s30  }
   0x8   :  { %s60_s8 = sshll.u32 %s2361_s7, 4  ;;  %s22_s10 = sshll.u32 %s2556_s0, 4  ;;  %s61_s8 = int_to_ptr.vmem [resolvable:$true] %s60_s8  ;;  %s23_s10 = int_to_ptr.hbm [resolvable:$true] %s22_s10 }
   0x9   :  { %66 = dma.hbm_to_vmem [thread:$0]  %s59_s28, 768, %s61_s8, [#allocation10], %s2359_s29, %s2359_s29, %s2360_s30  }
   0xa   :  { %s45_s12 = sshll.u32 %s2558_s2, 4  ;;  %s2362_s13 = smov [#allocation3]   ;;  %s46_s12 = int_to_ptr.hbm [resolvable:$true] %s45_s12 }
   0xb   :  { %s24_s14 = sshll.u32 %s2362_s13, 4  ;;  %s2363_s15 = smov [#allocation8]   ;;  %s25_s14 = int_to_ptr.vmem [resolvable:$true] %s24_s14 }
   0xc   :  { %27 = dma.hbm_to_vmem [thread:$0]  %s23_s10, 128, %s25_s14, [#allocation4]  }
   0xd   :  { %s47_s16 = sshll.u32 %s2363_s15, 4  ;;  %s2364_s17 = smov 384   ;;  %s48_s16 = int_to_ptr.vmem [resolvable:$true] %s47_s16 }
   0xe   :  { %s2365_s0 = smov 24   ;;  %s71_s20 = sshll.u32 %s2560_s4, 4  ;;  %s72_s20 = int_to_ptr.hbm [resolvable:$true] %s71_s20 }
   0xf   :  { %53 = dma.hbm_to_vmem [thread:$0]  %s46_s12, 12288, %s48_s16, [#allocation7], %s2364_s17, %s2364_s17, %s2365_s0  }
  0x10   :  { %s2366_s21 = smov [#allocation11]  }
  0x11   :  { %s73_s22 = sshll.u32 %s2366_s21, 4  ;;  %s74_s22 = int_to_ptr.vmem [resolvable:$true] %s73_s22 }
  0x12   :  { %79 = dma.hbm_to_vmem [thread:$0]  %s72_s20, 2048, %s74_s22, [#allocation10], %s2359_s29, %s2359_s29, %s2360_s30  }
  0x13   :  { %2348 = dma.done.wait [#allocation4], 128  }
  0x14   :  { %2349 = vsyncadd [#allocation4], 4294967168 }
  0x15   :  { %2350 = dma.done.wait [#allocation7], 12544  }
  0x16   :  { %2351 = vsyncadd [#allocation7], 4294954752 }
  0x17   :  { %2352 = dma.done.wait [#allocation10], 2816  }
  0x18   :  { %2353 = vsyncadd [#allocation10], 4294964480  ;;  %v1587_v0 = vld [vmem:[#allocation11 + $0x70] sm:$0xf]  ;;  %v2018_v1 = vld [vmem:[#allocation11 + $0x74] sm:$0xf0] }
  0x19   :  { %v1583_v2 = vld [vmem:[#allocation11 + $0x60] sm:$0xf]  ;;  %v1588_v3 = vor.u32 %v2018_v1, %v1587_v0  ;;  %v2017_v4 = vld [vmem:[#allocation11 + $0x64] sm:$0xf0]  ;;  %v1579_v6 = vld [vmem:[#allocation11 + $0x50] sm:$0xf] }
  0x1a   :  { %v1584_v5 = vor.u32 %v2017_v4, %v1583_v2  ;;  %v2016_v7 = vld [vmem:[#allocation11 + $0x54] sm:$0xf0]  ;;  %v1575_v9 = vld [vmem:[#allocation11 + $0x40] sm:$0xf]  ;;  %v2015_v10 = vld [vmem:[#allocation11 + $0x44] sm:$0xf0] }
  0x1b   :  { %281 = vmatpush.bf16.msra.mxu0 %v1588_v3  ;;  %v1580_v8 = vor.u32 %v2016_v7, %v1579_v6  ;;  %v1576_v11 = vor.u32 %v2015_v10, %v1575_v9  ;;  %v1571_v12 = vld [vmem:[#allocation11 + $0x30] sm:$0xf]  ;;  %v2014_v13 = vld [vmem:[#allocation11 + $0x34] sm:$0xf0]  ;;  %v1567_v15 = vld [vmem:[#allocation11 + $0x20] sm:$0xf] }
  0x1c   :  { %v1572_v14 = vor.u32 %v2014_v13, %v1571_v12  ;;  %v2013_v16 = vld [vmem:[#allocation11 + $0x24] sm:$0xf0]  ;;  %v1563_v18 = vld [vmem:[#allocation11 + $0x10] sm:$0xf]  ;;  %v2012_v19 = vld [vmem:[#allocation11 + $0x14] sm:$0xf0] }
  0x1d   :  { %v1568_v17 = vor.u32 %v2013_v16, %v1567_v15  ;;  %v1564_v20 = vor.u32 %v2012_v19, %v1563_v18  ;;  %v1559_v21 = vld [vmem:[#allocation11] sm:$0xf]  ;;  %v2011_v22 = vld [vmem:[#allocation11 + $0x4] sm:$0xf0]  ;;  %v214_v24 = vld [vmem:[#allocation3] sm:$0xff]  ;;  %vm584_vm13 = vcmask 130048  }
  0x1e   :  { %v1560_v23 = vor.u32 %v2011_v22, %v1559_v21  ;;  %v215_v25 = vpack.c.bf16 %v214_v24, %v214_v24  ;;  %v213_v26 = vld [vmem:[#allocation9 + $0x20] sm:$0xff]  ;;  %v1675_v32 = vld [vmem:[#allocation8 + $0x150] sm:$0xf]  ;;  %v2064_v33 = vld [vmem:[#allocation8 + $0x164] sm:$0xf0]  ;;  %s2368_s2 = smov [#allocation13]  }
  0x1f   :  { %282 = vmatpush.bf16.msra.mxu0 %v1584_v5  ;;  %v232_v27 = vperm.slane %v213_v26, 0  ;;  %v2061_v34 = vld [vmem:[#allocation8 + $0x154] sm:$0xf]  ;;  %v1676_v35 = vor.u32 %v2064_v33, %v1675_v32  ;;  %v1677_v36 = vld [vmem:[#allocation8 + $0x168] sm:$0xf0]  ;;  %s1535_s4 = sshll.u32 %s2368_s2, 4  ;;  %s1536_s4 = int_to_ptr.vmem [resolvable:$true] %s1535_s4 }
  0x20   :  { %v1683_v37 = vld [vmem:[#allocation8 + $0x158] sm:$0xf]  ;;  %v2065_v38 = vld [vmem:[#allocation8 + $0x16c] sm:$0xf0]  ;;  %v1680_v39 = vor.u32 %v2061_v34, %v1677_v36  ;;  %v1663_v41 = vld [vmem:[#allocation8 + $0x120] sm:$0xf] }
  0x21   :  { %v1684_v40 = vor.u32 %v2065_v38, %v1683_v37  ;;  %504 = vmatpush.bf16.msra.mxu1 %v1676_v35  ;;  %v2058_v42 = vld [vmem:[#allocation8 + $0x134] sm:$0xf0]  ;;  %v2055_v43 = vld [vmem:[#allocation8 + $0x124] sm:$0xf]  ;;  %v1665_v45 = vld [vmem:[#allocation8 + $0x138] sm:$0xf0] }
  0x22   :  { %517 = vmatpush.bf16.msra.mxu2 %v1680_v39  ;;  %v1664_v44 = vor.u32 %v2058_v42, %v1663_v41  ;;  %v1671_v46 = vld [vmem:[#allocation8 + $0x128] sm:$0xf]  ;;  %v2059_v47 = vld [vmem:[#allocation8 + $0x13c] sm:$0xf0]  ;;  %v1668_v48 = vor.u32 %v2055_v43, %v1665_v45  ;;  %v1651_v50 = vld [vmem:[#allocation8 + $0xf0] sm:$0xf] }
  0x23   :  { %283 = vmatpush.bf16.msra.mxu0 %v1580_v8  ;;  %531 = vmatpush.bf16.msra.mxu3 %v1684_v40  ;;  %v1672_v49 = vor.u32 %v2059_v47, %v1671_v46  ;;  %v2052_v51 = vld [vmem:[#allocation8 + $0x104] sm:$0xf0]  ;;  %v2049_v52 = vld [vmem:[#allocation8 + $0xf4] sm:$0xf]  ;;  %v1653_v54 = vld [vmem:[#allocation8 + $0x108] sm:$0xf0] }
  0x24   :  { %v1652_v53 = vor.u32 %v2052_v51, %v1651_v50  ;;  %v1659_v55 = vld [vmem:[#allocation8 + $0xf8] sm:$0xf]  ;;  %v2053_v56 = vld [vmem:[#allocation8 + $0x10c] sm:$0xf0]  ;;  %v1656_v57 = vor.u32 %v2049_v52, %v1653_v54  ;;  %v1639_v59 = vld [vmem:[#allocation8 + $0xc0] sm:$0xf] }
  0x25   :  { %505 = vmatpush.bf16.msra.mxu1 %v1664_v44  ;;  %v1660_v58 = vor.u32 %v2053_v56, %v1659_v55  ;;  %v2046_v60 = vld [vmem:[#allocation8 + $0xd4] sm:$0xf0]  ;;  %v2043_v61 = vld [vmem:[#allocation8 + $0xc4] sm:$0xf]  ;;  %v1641_v63 = vld [vmem:[#allocation8 + $0xd8] sm:$0xf0] }
  0x26   :  { %518 = vmatpush.bf16.msra.mxu2 %v1668_v48  ;;  %v1640_v62 = vor.u32 %v2046_v60, %v1639_v59  ;;  %v1647_v0 = vld [vmem:[#allocation8 + $0xc8] sm:$0xf]  ;;  %v2047_v1 = vld [vmem:[#allocation8 + $0xdc] sm:$0xf0]  ;;  %v1644_v2 = vor.u32 %v2043_v61, %v1641_v63  ;;  %v1627_v4 = vld [vmem:[#allocation8 + $0x90] sm:$0xf] }
  0x27   :  { %284 = vmatpush.bf16.msra.mxu0 %v1576_v11  ;;  %532 = vmatpush.bf16.msra.mxu3 %v1672_v49  ;;  %v1648_v3 = vor.u32 %v2047_v1, %v1647_v0  ;;  %v2040_v5 = vld [vmem:[#allocation8 + $0xa4] sm:$0xf0]  ;;  %v2037_v6 = vld [vmem:[#allocation8 + $0x94] sm:$0xf]  ;;  %v1629_v8 = vld [vmem:[#allocation8 + $0xa8] sm:$0xf0]  ;;  %v106_v1 = vlaneseq }
  0x28   :  { %v1628_v7 = vor.u32 %v2040_v5, %v1627_v4  ;;  %v1635_v9 = vld [vmem:[#allocation8 + $0x98] sm:$0xf]  ;;  %v2041_v10 = vld [vmem:[#allocation8 + $0xac] sm:$0xf0]  ;;  %v1632_v11 = vor.u32 %v2037_v6, %v1629_v8  ;;  %v1615_v13 = vld [vmem:[#allocation8 + $0x60] sm:$0xf] }
  0x29   :  { %506 = vmatpush.bf16.msra.mxu1 %v1652_v53  ;;  %v1636_v12 = vor.u32 %v2041_v10, %v1635_v9  ;;  %v2031_v15 = vld [vmem:[#allocation8 + $0x64] sm:$0xf]  ;;  %v1623_v18 = vld [vmem:[#allocation8 + $0x68] sm:$0xf]  ;;  %v2035_v19 = vld [vmem:[#allocation8 + $0x7c] sm:$0xf0] }
  0x2a   :  { %519 = vmatpush.bf16.msra.mxu2 %v1656_v57  ;;  %v1624_v21 = vor.u32 %v2035_v19, %v1623_v18  ;;  %v1603_v22 = vld [vmem:[#allocation8 + $0x30] sm:$0xf]  ;;  %v2025_v24 = vld [vmem:[#allocation8 + $0x34] sm:$0xf]  ;;  %v1591_v33 = vld [vmem:[#allocation8] sm:$0xf] }
  0x2b   :  { %285 = vmatpush.bf16.msra.mxu0 %v1572_v14  ;;  %533 = vmatpush.bf16.msra.mxu3 %v1660_v58  ;;  %v2034_v14 = vld [vmem:[#allocation8 + $0x74] sm:$0xf0]  ;;  %v2019_v36 = vld [vmem:[#allocation8 + $0x4] sm:$0xf]  ;;  %v1593_v37 = vld [vmem:[#allocation8 + $0x18] sm:$0xf0] }
  0x2c   :  { %v1616_v16 = vor.u32 %v2034_v14, %v1615_v13  ;;  %v2022_v34 = vld [vmem:[#allocation8 + $0x14] sm:$0xf0]  ;;  %v1599_v38 = vld [vmem:[#allocation8 + $0x8] sm:$0xf]  ;;  %v1596_v39 = vor.u32 %v2019_v36, %v1593_v37  ;;  %v2023_v40 = vld [vmem:[#allocation8 + $0x1c] sm:$0xf0] }
  0x2d   :  { %507 = vmatpush.bf16.msra.mxu1 %v1640_v62  ;;  %v1592_v35 = vor.u32 %v2022_v34, %v1591_v33  ;;  %v1600_v41 = vor.u32 %v2023_v40, %v1599_v38  ;;  %v2434_v53 = vld [vmem:[#allocation9] sm:$0xff]  ;;  %v344_v61 = vld [vmem:[#allocation6] sm:$0xff]  ;;  %v2439_v4 = vand.u32 127, %v106_v1  ;;  %v2441_v5 = vld [vmem:[#allocation9 + $0x8] sm:$0xff]  ;;  %v2367_v18 = vmov 0.0   ;;  %s1537_s25 = sshll.u32 %s2562_s6, 4  ;;  %s1538_s25 = int_to_ptr.hbm [resolvable:$true] %s1537_s25 }
  0x2e   :  { %520 = vmatpush.bf16.msra.mxu2 %v1644_v2  ;;  %v367_v56 = vperm.slane %v2434_v53, 0  ;;  %v369_v59 = vperm.slane %v2434_v53, 1  ;;  %v547_v6 = vperm.slane %v2434_v53, 7  ;;  %v545_v8 = vperm.slane %v2434_v53, 6  ;;  %s2369_s26 = smov [#allocation12]   ;;  %s1527_s6 = sshll.u32 %s2561_s5, 4  ;;  %s1528_s6 = int_to_ptr.hbm [resolvable:$true] %s1527_s6 }
  0x2f   :  { %286 = vmatpush.bf16.msra.mxu0 %v1568_v17  ;;  %534 = vmatpush.bf16.msra.mxu3 %v1648_v3  ;;  %v1617_v17 = vld [vmem:[#allocation8 + $0x78] sm:$0xf0]  ;;  %vm146_vm3 = vcmp.ge.s32.totalorder %v2439_v4, 8  ;;  %vm151_vm4 = vcmp.lt.s32.totalorder %v2439_v4, 16  ;;  %vm125_vm5 = vcmp.lt.s32.totalorder %v2439_v4, 8  ;;  %vm172_vm7 = vcmp.ge.s32.totalorder %v2439_v4, 16 }
  0x30   :  { %vm153_vm6 = vmand %vm146_vm3, %vm151_vm4  ;;  %v2450_v19 = vsel %vm125_vm5, 1.0, %v2367_v18  ;;  %vm177_vm8 = vcmp.lt.s32.totalorder %v2439_v4, 24  ;;  %vm198_vm9 = vcmp.ge.s32.totalorder %v2439_v4, 24  ;;  %vm203_vm10 = vcmp.lt.s32.totalorder %v2439_v4, 32  ;;  %s1525_s27 = sshll.u32 %s2369_s26, 4  ;;  %s1526_s27 = int_to_ptr.vmem [resolvable:$true] %s1525_s27 }
  0x31   :  { %508 = vmatpush.bf16.msra.mxu1 %v1628_v7  ;;  %v551_v7 = vperm.slane %v2441_v5, 0  ;;  %vm180_vm11 = vmand %vm172_vm7, %vm177_vm8  ;;  %vm1507_vm7 = vcmp.eq.s32.totalorder %v2439_v4, 2  ;;  %vm1504_vm8 = vcmp.lt.s32.totalorder %v2439_v4, 2 }
  0x32   :  { %521 = vmatpush.bf16.msra.mxu2 %v1632_v11  ;;  %vm207_vm12 = vmand %vm198_vm9, %vm203_vm10 }
  0x33   :  { %287 = vmatpush.bf16.msra.mxu0 %v1564_v20  ;;  %535 = vmatpush.bf16.msra.mxu3 %v1636_v12  ;;  %v1620_v20 = vor.u32 %v2031_v15, %v1617_v17 }
  0x35   :  { %509 = vmatpush.bf16.msra.mxu1 %v1616_v16 }
  0x36   :  { %522 = vmatpush.bf16.msra.mxu2 %v1620_v20  ;;  %v2453_v20 = vsel %vm153_vm6, 1.0, %v2367_v18 }
  0x37   :  { %288 = vmatpush.bf16.msra.mxu0 %v1560_v23  ;;  %536 = vmatpush.bf16.msra.mxu3 %v1624_v21  ;;  %v2028_v23 = vld [vmem:[#allocation8 + $0x44] sm:$0xf0] }
  0x38   :  { %v1604_v26 = vor.u32 %v2028_v23, %v1603_v22 }
  0x3a   :  { %289 = vmatmul.bf16.vlgmr.msra.gmra.mxu0 %v215_v25  ;;  %510 = vmatpush.bf16.msra.mxu1 %v1604_v26  ;;  %v2465_v26 = vsel %vm207_vm12, 1.0, %v2367_v18 }
  0x3e   :  { %511 = vmatpush.bf16.msra.mxu1 %v1592_v35 }
  0xb7   :  { %v290_v28 = vpop.f32.mrf.mxu0 }
  0xb8   :  { %v2429_v29 = vadd.f32 %v290_v28, %v232_v27  ;;  %v1605_v27 = vld [vmem:[#allocation8 + $0x48] sm:$0xf0]  ;;  %v1611_v28 = vld [vmem:[#allocation8 + $0x38] sm:$0xf] }
  0xba   :  { %345 = vadd.xlane.f32.xlu0 %v2429_v29  ;;  %v348_v31 = vmul.f32 %v2429_v29, %v2429_v29 }
  0xbf   :  { %v292_v30 = vpop.f32.mrf.mxu0 }
  0xc0   :  { %v2029_v30 = vld [vmem:[#allocation8 + $0x4c] sm:$0xf0] }
  0xc1   :  { %v1612_v32 = vor.u32 %v2029_v30, %v1611_v28 }
  0xc2   :  { %349 = vadd.xlane.f32.xlu0 %v348_v31  ;;  %v1608_v31 = vor.u32 %v2025_v24, %v1605_v27 }
  0xc3   :  { %537 = vmatpush.bf16.msra.mxu3 %v1612_v32 }
  0xc4   :  { %523 = vmatpush.bf16.msra.mxu2 %v1608_v31 }
  0xc7   :  { %538 = vmatpush.bf16.msra.mxu3 %v1600_v41 }
  0xc8   :  { %524 = vmatpush.bf16.msra.mxu2 %v1596_v39 }
 0x12d   :  { %v346_v25 = vpop.xlane.xlu0 %345 }
 0x12e   :  { %v347_v42 = vmul.f32 0.03125, %v346_v25  ;;  %v2462_v25 = vsel %vm180_vm11, 1.0, %v2367_v18 }
 0x130   :  { %v352_v44 = vmul.f32 %v347_v42, %v347_v42  ;;  %v354_v55 = vsub.f32 %v2429_v29, %v347_v42 }
 0x135   :  { %v350_v43 = vpop.xlane.xlu0 %349 }
 0x136   :  { %v351_v45 = vmul.f32 0.03125, %v350_v43 }
 0x138   :  { %v353_v46 = vsub.f32 %v351_v45, %v352_v44 }
 0x13a   :  { %v355_v47 = vadd.f32 1e-05, %v353_v46 }
 0x13c   :  { %2135 = vrsqrt.f32 %v355_v47  ;;  %vm362_vm1 = vweird.f32 %v355_v47 }
 0x142   :  { %v2136_v48 = vpop.eup %2135 }
 0x143   :  { %v357_v49 = vmul.f32 %v2136_v48, %v355_v47  ;;  %vm363_vm0 = vweird.f32 %v2136_v48 }
 0x144   :  { %vm364_vm2 = vmor %vm362_vm1, %vm363_vm0 }
 0x145   :  { %v358_v50 = vmul.f32 %v2136_v48, %v357_v49 }
 0x147   :  { %v359_v51 = vmul.f32 0.5, %v358_v50 }
 0x149   :  { %v360_v52 = vsub.f32 1.5, %v359_v51 }
 0x14b   :  { %v361_v54 = vmul.f32 %v2136_v48, %v360_v52 }
 0x14d   :  { %v365_v57 = vsel %vm364_vm2, %v2136_v48, %v361_v54 }
 0x14e   :  { %v366_v58 = vmul.f32 %v365_v57, %v354_v55 }
 0x150   :  { %v368_v60 = vmul.f32 %v367_v56, %v366_v58 }
 0x152   :  { %v370_v62 = vadd.f32 %v369_v59, %v368_v60 }
 0x154   :  { %v375_v63 = vpack.c.bf16 %v370_v62, %v344_v61 }
 0x156   :  { %512 = vmatmul.bf16.vlgmr.msra.gmra.mxu1 %v375_v63  ;;  %525 = vmatmul.bf16.vlgmr.msra.gmra.mxu2 %v375_v63 }
 0x157   :  { %539 = vmatmul.bf16.vlgmr.msra.gmra.mxu3 %v375_v63 }
 0x1d3   :  { %v513_v0 = vpop.f32.mrf.mxu1 }
 0x1d9   :  { %v526_v2 = vpop.f32.mrf.mxu2 }
 0x1da   :  { %v540_v3 = vpop.f32.mrf.mxu3  ;;  %v548_v11 = vadd.f32 %v547_v6, %v526_v2 }
 0x1db   :  { %v514_v9 = vpop.f32.mrf.mxu1  ;;  %v552_v14 = vadd.f32 %v551_v7, %v540_v3 }
 0x1dc   :  { %v546_v15 = vadd.f32 %v545_v8, %v514_v9 }
 0x1de   :  { %v555_v22 = vmul.f32 %v546_v15, %v2450_v19  ;;  %v556_v23 = vmul.f32 %v546_v15, %v2453_v20  ;;  %v557_v27 = vmul.f32 %v546_v15, %v2462_v25  ;;  %v558_v28 = vmul.f32 %v546_v15, %v2465_v26 }
 0x1e0   :  { %v559_v24 = vpack.c.bf16 %v556_v23, %v555_v22  ;;  %v560_v30 = vpack.c.bf16 %v558_v28, %v557_v27  ;;  %v2056_v22 = vld [vmem:[#allocation8 + $0x12c] sm:$0xf]  ;;  %v1711_v23 = vld [vmem:[#allocation8 + $0x140] sm:$0xf0]  ;;  %v2050_v27 = vld [vmem:[#allocation8 + $0xfc] sm:$0xf] }
 0x1e1   :  { %v528_v10 = vpop.f32.mrf.mxu2  ;;  %v1707_v28 = vld [vmem:[#allocation8 + $0x110] sm:$0xf0] }
 0x1e2   :  { %v549_v12 = vadd.f32 %v547_v6, %v528_v10  ;;  %v542_v13 = vpop.f32.mrf.mxu3 }
 0x1e3   :  { %v553_v16 = vadd.f32 %v551_v7, %v542_v13 }
 0x1e4   :  { %v550_v17 = vpack.c.bf16 %v549_v12, %v548_v11 }
 0x1e5   :  { %v554_v21 = vpack.c.bf16 %v553_v16, %v552_v14  ;;  %v2062_v16 = vld [vmem:[#allocation8 + $0x15c] sm:$0xf] }
 0x1e6   :  { %568 = vmatpush.bf16.xpose.msrb.mxu0 %v550_v17  ;;  %v1715_v17 = vld [vmem:[#allocation8 + $0x170] sm:$0xf0] }
 0x1e7   :  { %644 = vmatpush.bf16.msrb.mxu1 %v554_v21  ;;  %v1718_v21 = vor.u32 %v2062_v16, %v1715_v17  ;;  %v1729_v17 = vld [vmem:[#allocation8 + $0x70] sm:$0xf] }
 0x1e9   :  { %697 = vmatpush.bf16.msrb.mxu2 %v1718_v21  ;;  %v2036_v21 = vld [vmem:[#allocation8 + $0x84] sm:$0xf0] }
 0x1ed   :  { %569 = vmatmul.bf16.vlgmr.msrb.gmra.mxu0 %v559_v24  ;;  %v1714_v24 = vor.u32 %v2056_v22, %v1711_v23  ;;  %v1730_v22 = vor.u32 %v2036_v21, %v1729_v17  ;;  %v1725_v23 = vld [vmem:[#allocation8 + $0x40] sm:$0xf] }
 0x1ef   :  { %698 = vmatpush.bf16.msrb.mxu2 %v1714_v24  ;;  %v2030_v24 = vld [vmem:[#allocation8 + $0x54] sm:$0xf0] }
 0x1fd   :  { %574 = vmatmul.bf16.gmra.mxu0 %v560_v30  ;;  %v1710_v30 = vor.u32 %v2050_v27, %v1707_v28  ;;  %v1726_v27 = vor.u32 %v2030_v24, %v1725_v23  ;;  %v1721_v28 = vld [vmem:[#allocation8 + $0x10] sm:$0xf] }
 0x1ff   :  { %699 = vmatpush.bf16.msrb.mxu2 %v1710_v30  ;;  %v2024_v30 = vld [vmem:[#allocation8 + $0x24] sm:$0xf0] }
 0x26a   :  { %v570_v31 = vpop.f32.mrf.mxu0 }
 0x26b   :  { %v580_v32 = vmul.f32 0.35355338, %v570_v31  ;;  %v2044_v31 = vld [vmem:[#allocation8 + $0xcc] sm:$0xf] }
 0x26d   :  { %v585_v33 = vsel %vm584_vm13, %v580_v32, -inf }
 0x26e   :  { %586 = vmax.xlane.f32.xlu1 %v585_v33 }
 0x272   :  { %v572_v34 = vpop.f32.mrf.mxu0 }
 0x273   :  { %v581_v35 = vmul.f32 0.35355338, %v572_v34  ;;  %v2038_v34 = vld [vmem:[#allocation8 + $0x9c] sm:$0xf] }
 0x275   :  { %v588_v36 = vsel %vm584_vm13, %v581_v35, -inf }
 0x276   :  { %589 = vmax.xlane.f32.xlu1 %v588_v36 }
 0x27a   :  { %v575_v37 = vpop.f32.mrf.mxu0 }
 0x27b   :  { %v582_v38 = vmul.f32 0.35355338, %v575_v37  ;;  %v2032_v37 = vld [vmem:[#allocation8 + $0x6c] sm:$0xf] }
 0x27d   :  { %v591_v39 = vsel %vm584_vm13, %v582_v38, -inf }
 0x27e   :  { %592 = vmax.xlane.f32.xlu2 %v591_v39 }
 0x282   :  { %v577_v40 = vpop.f32.mrf.mxu0 }
 0x283   :  { %v583_v41 = vmul.f32 0.35355338, %v577_v40  ;;  %v2026_v40 = vld [vmem:[#allocation8 + $0x3c] sm:$0xf] }
 0x285   :  { %v594_v42 = vsel %vm584_vm13, %v583_v41, -inf }
 0x286   :  { %595 = vmax.xlane.f32.xlu2 %v594_v42 }
 0x2e1   :  { %v587_v43 = vpop.xlane.xlu1 %586 }
 0x2e2   :  { %v597_v44 = vsub.f32 %v580_v32, %v587_v43  ;;  %v1703_v32 = vld [vmem:[#allocation8 + $0xe0] sm:$0xf0]  ;;  %v2020_v43 = vld [vmem:[#allocation8 + $0xc] sm:$0xf] }
 0x2e3   :  { %v1706_v33 = vor.u32 %v2044_v31, %v1703_v32  ;;  %v1722_v31 = vor.u32 %v2024_v30, %v1721_v28 }
 0x2e4   :  { %v601_v45 = vmul.f32 1.442695, %v597_v44  ;;  %v1687_v44 = vld [vmem:[#allocation8 + $0x20] sm:$0xf0] }
 0x2e5   :  { %700 = vmatpush.bf16.msrb.mxu2 %v1706_v33 }
 0x2e6   :  { %2137 = vpow2.f32 %v601_v45  ;;  %v1690_v45 = vor.u32 %v2020_v43, %v1687_v44 }
 0x2e9   :  { %v590_v46 = vpop.xlane.xlu1 %589 }
 0x2ea   :  { %v598_v47 = vsub.f32 %v581_v35, %v590_v46  ;;  %v1699_v35 = vld [vmem:[#allocation8 + $0xb0] sm:$0xf0] }
 0x2eb   :  { %v1702_v36 = vor.u32 %v2038_v34, %v1699_v35 }
 0x2ec   :  { %v2138_v48 = vpop.eup %2137  ;;  %v603_v49 = vmul.f32 1.442695, %v598_v47 }
 0x2ed   :  { %v609_v50 = vsel %vm584_vm13, %v2138_v48, 0.0  ;;  %701 = vmatpush.bf16.msrb.mxu2 %v1702_v36 }
 0x2ee   :  { %2139 = vpow2.f32 %v603_v49  ;;  %610 = vadd.xlane.f32.xlu0 %v609_v50 }
 0x2f1   :  { %v593_v51 = vpop.xlane.xlu2 %592 }
 0x2f2   :  { %v599_v52 = vsub.f32 %v582_v38, %v593_v51  ;;  %v1695_v38 = vld [vmem:[#allocation8 + $0x80] sm:$0xf0] }
 0x2f3   :  { %v1698_v39 = vor.u32 %v2032_v37, %v1695_v38  ;;  %v2063_v37 = vld [vmem:[#allocation8 + $0x164] sm:$0xf]  ;;  %v1779_v38 = vld [vmem:[#allocation8 + $0x178] sm:$0xf0] }
 0x2f4   :  { %v2140_v54 = vpop.eup %2139  ;;  %v605_v55 = vmul.f32 1.442695, %v599_v52 }
 0x2f5   :  { %v612_v56 = vsel %vm584_vm13, %v2140_v54, 0.0  ;;  %702 = vmatpush.bf16.msrb.mxu2 %v1698_v39  ;;  %v1782_v39 = vor.u32 %v2063_v37, %v1779_v38 }
 0x2f6   :  { %2141 = vpow2.f32 %v605_v55  ;;  %613 = vadd.xlane.f32.xlu1 %v612_v56 }
 0x2f7   :  { %843 = vmatpush.bf16.msra.mxu0 %v1782_v39 }
 0x2f9   :  { %v596_v57 = vpop.xlane.xlu2 %595 }
 0x2fa   :  { %v600_v58 = vsub.f32 %v583_v41, %v596_v57  ;;  %v1691_v41 = vld [vmem:[#allocation8 + $0x50] sm:$0xf0] }
 0x2fb   :  { %v1694_v42 = vor.u32 %v2026_v40, %v1691_v41 }
 0x2fc   :  { %v2142_v59 = vpop.eup %2141  ;;  %v607_v60 = vmul.f32 1.442695, %v600_v58 }
 0x2fd   :  { %v615_v61 = vsel %vm584_vm13, %v2142_v59, 0.0  ;;  %703 = vmatpush.bf16.msrb.mxu2 %v1694_v42 }
 0x2fe   :  { %2143 = vpow2.f32 %v607_v60  ;;  %616 = vadd.xlane.f32.xlu2 %v615_v61 }
 0x301   :  { %704 = vmatpush.bf16.msrb.mxu2 %v1690_v45 }
 0x304   :  { %v2144_v62 = vpop.eup %2143 }
 0x305   :  { %v618_v63 = vsel %vm584_vm13, %v2144_v62, 0.0 }
 0x306   :  { %619 = vadd.xlane.f32.xlu0 %v618_v63 }
 0x361   :  { %v611_v0 = vpop.xlane.xlu0 %610 }
 0x362   :  { %2145 = vrcp.f32 %v611_v0 }
 0x368   :  { %v2146_v2 = vpop.eup %2145 }
 0x369   :  { %v614_v1 = vpop.xlane.xlu1 %613  ;;  %v625_v6 = vmul.f32 %v2146_v2, %v2138_v48  ;;  %v2066_v2 = vld [vmem:[#allocation8 + $0x174] sm:$0xf0] }
 0x36a   :  { %2147 = vrcp.f32 %v614_v1  ;;  %v1749_v1 = vld [vmem:[#allocation8 + $0x160] sm:$0xf] }
 0x370   :  { %v2148_v3 = vpop.eup %2147 }
 0x371   :  { %v626_v7 = vmul.f32 %v2148_v3, %v2140_v54  ;;  %v617_v9 = vpop.xlane.xlu2 %616  ;;  %v1750_v3 = vor.u32 %v2066_v2, %v1749_v1  ;;  %v1767_v1 = vld [vmem:[#allocation8 + $0xe8] sm:$0xf0] }
 0x372   :  { %2149 = vrcp.f32 %v617_v9  ;;  %v1741_v9 = vld [vmem:[#allocation8 + $0x100] sm:$0xf] }
 0x373   :  { %v629_v8 = vpack.c.bf16 %v626_v7, %v625_v6  ;;  %787 = vmatpush.bf16.msrb.mxu3 %v1750_v3  ;;  %v1745_v6 = vld [vmem:[#allocation8 + $0x130] sm:$0xf]  ;;  %v2060_v7 = vld [vmem:[#allocation8 + $0x144] sm:$0xf0]  ;;  %v2039_v3 = vld [vmem:[#allocation8 + $0xa4] sm:$0xf] }
 0x375   :  { %1685 = vmatmul.msk.bf16.vlgmr.msrb.gmra.mxu1 %vm584_vm13, %v629_v8  ;;  %v1746_v8 = vor.u32 %v2060_v7, %v1745_v6  ;;  %v1763_v6 = vld [vmem:[#allocation8 + $0xb8] sm:$0xf0] }
 0x376   :  { %v1766_v7 = vor.u32 %v2039_v3, %v1763_v6  ;;  %v1833_v6 = vld [vmem:[#allocation8 + $0x240] sm:$0xf] }
 0x377   :  { %788 = vmatpush.bf16.msrb.mxu3 %v1746_v8  ;;  %v2033_v8 = vld [vmem:[#allocation8 + $0x74] sm:$0xf] }
 0x378   :  { %v2150_v11 = vpop.eup %2149 }
 0x379   :  { %v620_v10 = vpop.xlane.xlu0 %619  ;;  %v627_v13 = vmul.f32 %v2150_v11, %v2142_v59  ;;  %v664_v59 = vperm.slane %v2434_v53, 4 }
 0x37a   :  { %2151 = vrcp.f32 %v620_v10  ;;  %v2054_v10 = vld [vmem:[#allocation8 + $0x114] sm:$0xf0] }
 0x37b   :  { %v1742_v11 = vor.u32 %v2054_v10, %v1741_v9  ;;  %v1759_v9 = vld [vmem:[#allocation8 + $0x88] sm:$0xf0] }
 0x37c   :  { %v1762_v10 = vor.u32 %v2033_v8, %v1759_v9  ;;  %v2091_v8 = vld [vmem:[#allocation8 + $0x244] sm:$0xf] }
 0x37d   :  { %789 = vmatpush.bf16.msrb.mxu3 %v1742_v11  ;;  %v2027_v11 = vld [vmem:[#allocation8 + $0x44] sm:$0xf] }
 0x380   :  { %v2152_v12 = vpop.eup %2151 }
 0x381   :  { %v628_v14 = vmul.f32 %v2152_v12, %v2144_v62  ;;  %v2048_v12 = vld [vmem:[#allocation8 + $0xe4] sm:$0xf0] }
 0x383   :  { %v630_v15 = vpack.c.bf16 %v628_v14, %v627_v13  ;;  %v1733_v14 = vld [vmem:[#allocation8 + $0xa0] sm:$0xf] }
 0x385   :  { %1686 = vmatmul.msk.bf16.gmra.mxu1 %vm584_vm13, %v630_v15  ;;  %v2042_v15 = vld [vmem:[#allocation8 + $0xb4] sm:$0xf0] }
 0x386   :  { %v1734_v16 = vor.u32 %v2042_v15, %v1733_v14  ;;  %v1751_v14 = vld [vmem:[#allocation8 + $0x28] sm:$0xf0] }
 0x3f2   :  { %v646_v46 = vpop.f32.mrf.mxu1 }
 0x3f3   :  { %v656_v50 = vmul.f32 %v646_v46, %v2450_v19 }
 0x3fa   :  { %v648_v47 = vpop.f32.mrf.mxu1 }
 0x3fb   :  { %v657_v49 = vmul.f32 %v648_v47, %v2453_v20 }
 0x3fd   :  { %v660_v52 = vadd.f32 %v657_v49, %v656_v50  ;;  %v733_v49 = vperm.slane %v2434_v53, 2 }
 0x402   :  { %v651_v48 = vpop.f32.mrf.mxu1 }
 0x403   :  { %v658_v51 = vmul.f32 %v651_v48, %v2462_v25 }
 0x405   :  { %v661_v55 = vadd.f32 %v660_v52, %v658_v51  ;;  %v735_v52 = vperm.slane %v2434_v53, 3 }
 0x40a   :  { %v653_v54 = vpop.f32.mrf.mxu1 }
 0x40b   :  { %v659_v56 = vmul.f32 %v653_v54, %v2465_v26 }
 0x40d   :  { %v662_v57 = vadd.f32 %v661_v55, %v659_v56 }
 0x40f   :  { %v663_v58 = vpack.c.bf16 %v662_v57, %v662_v57  ;;  %v2057_v57 = vld [vmem:[#allocation8 + $0x134] sm:$0xf] }
 0x411   :  { %705 = vmatmul.bf16.vlgmr.msrb.gmra.mxu2 %v663_v58  ;;  %v1775_v58 = vld [vmem:[#allocation8 + $0x148] sm:$0xf0] }
 0x494   :  { %v706_v60 = vpop.f32.mrf.mxu2 }
 0x495   :  { %v707_v61 = vadd.f32 %v706_v60, %v664_v59  ;;  %v1778_v59 = vor.u32 %v2057_v57, %v1775_v58  ;;  %v2051_v60 = vld [vmem:[#allocation8 + $0x104] sm:$0xf]  ;;  %v1845_v58 = vld [vmem:[#allocation8 + $0x270] sm:$0xf] }
 0x497   :  { %v2485_v62 = vadd.f32 %v707_v61, %v2429_v29  ;;  %v1737_v29 = vld [vmem:[#allocation8 + $0xd0] sm:$0xf]  ;;  %844 = vmatpush.bf16.msra.mxu0 %v1778_v59  ;;  %v1771_v61 = vld [vmem:[#allocation8 + $0x118] sm:$0xf0]  ;;  %v2100_v59 = vld [vmem:[#allocation8 + $0x284] sm:$0xf0] }
 0x498   :  { %v1738_v13 = vor.u32 %v2048_v12, %v1737_v29  ;;  %v1755_v29 = vld [vmem:[#allocation8 + $0x58] sm:$0xf0] }
 0x499   :  { %711 = vadd.xlane.f32.xlu1 %v2485_v62  ;;  %v714_v63 = vmul.f32 %v2485_v62, %v2485_v62  ;;  %v1758_v12 = vor.u32 %v2027_v11, %v1755_v29  ;;  %v1841_v11 = vld [vmem:[#allocation8 + $0x248] sm:$0xf]  ;;  %v2095_v29 = vld [vmem:[#allocation8 + $0x25c] sm:$0xf0] }
 0x49a   :  { %790 = vmatpush.bf16.msrb.mxu3 %v1738_v13  ;;  %v2021_v13 = vld [vmem:[#allocation8 + $0x14] sm:$0xf] }
 0x49b   :  { %715 = vadd.xlane.f32.xlu2 %v714_v63  ;;  %v1774_v63 = vor.u32 %v2051_v60, %v1771_v61  ;;  %v1754_v15 = vor.u32 %v2021_v13, %v1751_v14  ;;  %v2097_v60 = vld [vmem:[#allocation8 + $0x274] sm:$0xf]  ;;  %v1846_v61 = vor.u32 %v2100_v59, %v1845_v58  ;;  %v1842_v13 = vor.u32 %v2095_v29, %v1841_v11  ;;  %v1821_v14 = vld [vmem:[#allocation8 + $0x210] sm:$0xf] }
 0x49c   :  { %v708_v0 = vpop.f32.mrf.mxu2 }
 0x49d   :  { %845 = vmatpush.bf16.msra.mxu0 %v1774_v63  ;;  %v2045_v0 = vld [vmem:[#allocation8 + $0xd4] sm:$0xf]  ;;  %v1847_v63 = vld [vmem:[#allocation8 + $0x288] sm:$0xf0] }
 0x49e   :  { %791 = vmatpush.bf16.msrb.mxu3 %v1734_v16  ;;  %v1770_v2 = vor.u32 %v2045_v0, %v1767_v1  ;;  %v738_v16 = vperm.slane %v2441_v5, 1  ;;  %v1853_v0 = vld [vmem:[#allocation8 + $0x278] sm:$0xf]  ;;  %v2101_v1 = vld [vmem:[#allocation8 + $0x28c] sm:$0xf0] }
 0x49f   :  { %v1854_v3 = vor.u32 %v2101_v1, %v1853_v0 }
 0x4a1   :  { %846 = vmatpush.bf16.msra.mxu0 %v1770_v2  ;;  %v1850_v2 = vor.u32 %v2097_v60, %v1847_v63 }
 0x4a2   :  { %792 = vmatpush.bf16.msrb.mxu3 %v1730_v22 }
 0x4a5   :  { %847 = vmatpush.bf16.msra.mxu0 %v1766_v7  ;;  %v2094_v7 = vld [vmem:[#allocation8 + $0x254] sm:$0xf0] }
 0x4a6   :  { %793 = vmatpush.bf16.msrb.mxu3 %v1726_v27  ;;  %v1834_v9 = vor.u32 %v2094_v7, %v1833_v6  ;;  %v2502_v6 = vld [vmem:[#allocation9 + $0x10] sm:$0xff] }
 0x4a7   :  { %v936_v29 = vperm.slane %v2502_v6, 1 }
 0x4a9   :  { %848 = vmatpush.bf16.msra.mxu0 %v1762_v10  ;;  %v1835_v10 = vld [vmem:[#allocation8 + $0x258] sm:$0xf0] }
 0x4aa   :  { %794 = vmatpush.bf16.msrb.mxu3 %v1722_v31 }
 0x4ad   :  { %849 = vmatpush.bf16.msra.mxu0 %v1758_v12  ;;  %v1838_v12 = vor.u32 %v2091_v8, %v1835_v10 }
 0x4b1   :  { %850 = vmatpush.bf16.msra.mxu0 %v1754_v15  ;;  %v2088_v15 = vld [vmem:[#allocation8 + $0x224] sm:$0xf0] }
 0x50c   :  { %v712_v32 = vpop.xlane.xlu1 %711 }
 0x50d   :  { %v713_v33 = vmul.f32 0.03125, %v712_v32 }
 0x50e   :  { %v716_v34 = vpop.xlane.xlu2 %715 }
 0x50f   :  { %v718_v35 = vmul.f32 %v713_v33, %v713_v33  ;;  %v717_v36 = vmul.f32 0.03125, %v716_v34  ;;  %v720_v48 = vsub.f32 %v2485_v62, %v713_v33 }
 0x511   :  { %v719_v40 = vsub.f32 %v717_v36, %v718_v35  ;;  %v810_v36 = vperm.slane %v2434_v53, 5  ;;  %v1877_v53 = vld [vmem:[#allocation8 + $0x2d8] sm:$0xf] }
 0x513   :  { %v721_v41 = vadd.f32 1e-05, %v719_v40 }
 0x515   :  { %2153 = vrsqrt.f32 %v721_v41  ;;  %vm728_vm15 = vweird.f32 %v721_v41 }
 0x51b   :  { %v2154_v42 = vpop.eup %2153 }
 0x51c   :  { %v723_v43 = vmul.f32 %v2154_v42, %v721_v41  ;;  %vm729_vm14 = vweird.f32 %v2154_v42  ;;  %v1869_v41 = vld [vmem:[#allocation8 + $0x2d0] sm:$0xf] }
 0x51d   :  { %vm730_vm0 = vmor %vm728_vm15, %vm729_vm14 }
 0x51e   :  { %v724_v44 = vmul.f32 %v2154_v42, %v723_v43  ;;  %v2109_v43 = vld [vmem:[#allocation8 + $0x2d4] sm:$0xf] }
 0x520   :  { %v725_v45 = vmul.f32 0.5, %v724_v44 }
 0x522   :  { %v726_v46 = vsub.f32 1.5, %v725_v45  ;;  %v1871_v45 = vld [vmem:[#allocation8 + $0x2e8] sm:$0xf0] }
 0x524   :  { %v727_v47 = vmul.f32 %v2154_v42, %v726_v46  ;;  %v2113_v46 = vld [vmem:[#allocation8 + $0x2ec] sm:$0xf0] }
 0x526   :  { %v731_v50 = vsel %vm730_vm0, %v2154_v42, %v727_v47  ;;  %v2112_v42 = vld [vmem:[#allocation8 + $0x2e4] sm:$0xf0]  ;;  %v1874_v47 = vor.u32 %v2109_v43, %v1871_v45  ;;  %v1805_v43 = vld [vmem:[#allocation8 + $0x1b8] sm:$0xf] }
 0x527   :  { %v732_v51 = vmul.f32 %v731_v50, %v720_v48  ;;  %v1870_v44 = vor.u32 %v2112_v42, %v1869_v41  ;;  %v1878_v48 = vor.u32 %v2113_v46, %v1877_v53  ;;  %v2103_v50 = vld [vmem:[#allocation8 + $0x2a4] sm:$0xf]  ;;  %v1799_v42 = vld [vmem:[#allocation8 + $0x1c8] sm:$0xf0]  ;;  %v1785_v46 = vld [vmem:[#allocation8 + $0x180] sm:$0xf] }
 0x528   :  { %1084 = vmatpush.bf16.msra.mxu2 %v1874_v47  ;;  %v2070_v47 = vld [vmem:[#allocation8 + $0x194] sm:$0xf0] }
 0x529   :  { %v734_v54 = vmul.f32 %v733_v49, %v732_v51  ;;  %1071 = vmatpush.bf16.msra.mxu1 %v1870_v44  ;;  %1098 = vmatpush.bf16.msra.mxu3 %v1878_v48  ;;  %v2106_v49 = vld [vmem:[#allocation8 + $0x2b4] sm:$0xf0]  ;;  %v2077_v44 = vld [vmem:[#allocation8 + $0x1cc] sm:$0xf0]  ;;  %v2067_v48 = vld [vmem:[#allocation8 + $0x184] sm:$0xf] }
 0x52a   :  { %v1806_v53 = vor.u32 %v2077_v44, %v1805_v43 }
 0x52b   :  { %v736_v55 = vadd.f32 %v735_v52, %v734_v54  ;;  %v1859_v52 = vld [vmem:[#allocation8 + $0x2b8] sm:$0xf0]  ;;  %v1865_v54 = vld [vmem:[#allocation8 + $0x2a8] sm:$0xf] }
 0x52d   :  { %v737_v56 = vpack.c.bf16 %v736_v55, %v736_v55  ;;  %v2107_v55 = vld [vmem:[#allocation8 + $0x2bc] sm:$0xf0] }
 0x52e   :  { %v1866_v57 = vor.u32 %v2107_v55, %v1865_v54 }
 0x52f   :  { %795 = vmatmul.bf16.vlgmr.msrb.gmra.mxu3 %v737_v56  ;;  %v1862_v56 = vor.u32 %v2103_v50, %v1859_v52  ;;  %v1793_v50 = vld [vmem:[#allocation8 + $0x188] sm:$0xf] }
 0x530   :  { %1099 = vmatpush.bf16.msra.mxu3 %v1866_v57 }
 0x531   :  { %1085 = vmatpush.bf16.msra.mxu2 %v1862_v56 }
 0x534   :  { %1100 = vmatpush.bf16.msra.mxu3 %v1854_v3 }
 0x535   :  { %1086 = vmatpush.bf16.msra.mxu2 %v1850_v2 }
 0x538   :  { %1101 = vmatpush.bf16.msra.mxu3 %v1842_v13  ;;  %v911_v13 = vld [vmem:[#allocation6 + $0x8] sm:$0xff] }
 0x539   :  { %1087 = vmatpush.bf16.msra.mxu2 %v1838_v12 }
 0x5b2   :  { %v796_v17 = vpop.f32.mrf.mxu3 }
 0x5b3   :  { %v797_v21 = vadd.f32 %v796_v17, %v738_v16  ;;  %v2085_v16 = vld [vmem:[#allocation8 + $0x214] sm:$0xf]  ;;  %v1822_v17 = vor.u32 %v2088_v15, %v1821_v14 }
 0x5b5   :  { %v800_v22 = vmul.f32 %v797_v21, %v797_v21 }
 0x5b7   :  { %v801_v23 = vmul.f32 %v800_v22, %v797_v21  ;;  %v1829_v22 = vld [vmem:[#allocation8 + $0x218] sm:$0xf] }
 0x5b9   :  { %v802_v24 = vmul.f32 0.044715, %v801_v23  ;;  %v2089_v23 = vld [vmem:[#allocation8 + $0x22c] sm:$0xf0] }
 0x5ba   :  { %v798_v27 = vpop.f32.mrf.mxu3 }
 0x5bb   :  { %v803_v28 = vadd.f32 %v802_v24, %v797_v21  ;;  %v1830_v27 = vor.u32 %v2089_v23, %v1829_v22  ;;  %v2507_v22 = vld [vmem:[#allocation9 + $0x18] sm:$0xff]  ;;  %v1114_v23 = vperm.slane %v2502_v6, 7 }
 0x5bd   :  { %v804_v30 = vmul.f32 0.7978846, %v803_v28  ;;  %1102 = vmatpush.bf16.msra.mxu3 %v1830_v27  ;;  %v1809_v28 = vld [vmem:[#allocation8 + $0x1e0] sm:$0xf]  ;;  %v1112_v27 = vperm.slane %v2502_v6, 6 }
 0x5bf   :  { %2155 = vtanh.f32 %v804_v30  ;;  %v2082_v30 = vld [vmem:[#allocation8 + $0x1f4] sm:$0xf0] }
 0x5c5   :  { %v2156_v31 = vpop.eup %2155 }
 0x5c6   :  { %v806_v32 = vadd.f32 1.0, %v2156_v31  ;;  %v2079_v31 = vld [vmem:[#allocation8 + $0x1e4] sm:$0xf] }
 0x5c8   :  { %v807_v33 = vmul.f32 0.5, %v806_v32  ;;  %v1810_v32 = vor.u32 %v2082_v30, %v1809_v28 }
 0x5ca   :  { %v808_v34 = vmul.f32 %v807_v33, %v797_v21  ;;  %v1823_v21 = vld [vmem:[#allocation8 + $0x228] sm:$0xf0]  ;;  %v1811_v33 = vld [vmem:[#allocation8 + $0x1f8] sm:$0xf0] }
 0x5cb   :  { %v1826_v24 = vor.u32 %v2085_v16, %v1823_v21 }
 0x5cc   :  { %v809_v35 = vpack.c.bf16 %v808_v34, %v808_v34  ;;  %v1817_v34 = vld [vmem:[#allocation8 + $0x1e8] sm:$0xf] }
 0x5cd   :  { %1088 = vmatpush.bf16.msra.mxu2 %v1826_v24  ;;  %v1118_v24 = vperm.slane %v2507_v22, 0 }
 0x5ce   :  { %851 = vmatmul.bf16.vlgmr.msra.gmra.mxu0 %v809_v35  ;;  %v2083_v35 = vld [vmem:[#allocation8 + $0x1fc] sm:$0xf0] }
 0x64b   :  { %v852_v37 = vpop.f32.mrf.mxu0 }
 0x64c   :  { %v853_v38 = vadd.f32 %v852_v37, %v810_v36  ;;  %v1814_v36 = vor.u32 %v2079_v31, %v1811_v33  ;;  %v1818_v37 = vor.u32 %v2083_v35, %v1817_v34 }
 0x64e   :  { %v2496_v5 = vadd.f32 %v853_v38, %v2485_v62  ;;  %v1857_v62 = vld [vmem:[#allocation8 + $0x2a0] sm:$0xf]  ;;  %1089 = vmatpush.bf16.msra.mxu2 %v1814_v36  ;;  %1103 = vmatpush.bf16.msra.mxu3 %v1818_v37  ;;  %v1797_v38 = vld [vmem:[#allocation8 + $0x1b0] sm:$0xf] }
 0x64f   :  { %v1858_v51 = vor.u32 %v2106_v49, %v1857_v62  ;;  %v1786_v62 = vor.u32 %v2070_v47, %v1785_v46  ;;  %v1787_v49 = vld [vmem:[#allocation8 + $0x198] sm:$0xf0] }
 0x650   :  { %857 = vst [vmem:[#allocation13] sm:$0xff] %v2496_v5  ;;  %912 = vadd.xlane.f32.xlu0 %v2496_v5  ;;  %v915_v39 = vmul.f32 %v2496_v5, %v2496_v5  ;;  %v1790_v52 = vor.u32 %v2067_v48, %v1787_v49 }
 0x651   :  { %1072 = vmatpush.bf16.msra.mxu1 %v1858_v51  ;;  %v2071_v51 = vld [vmem:[#allocation8 + $0x19c] sm:$0xf0] }
 0x652   :  { %916 = vadd.xlane.f32.xlu1 %v915_v39  ;;  %v2076_v39 = vld [vmem:[#allocation8 + $0x1c4] sm:$0xf0]  ;;  %1104 = vmatpush.bf16.msra.mxu3 %v1806_v53  ;;  %v1794_v54 = vor.u32 %v2071_v51, %v1793_v50 }
 0x653   :  { %v854_v40 = vpop.f32.mrf.mxu0  ;;  %v1798_v41 = vor.u32 %v2076_v39, %v1797_v38 }
 0x654   :  { %v2073_v40 = vld [vmem:[#allocation8 + $0x1b4] sm:$0xf] }
 0x655   :  { %1073 = vmatpush.bf16.msra.mxu1 %v1846_v61  ;;  %v1802_v45 = vor.u32 %v2073_v40, %v1799_v42 }
 0x656   :  { %1105 = vmatpush.bf16.msra.mxu3 %v1794_v54 }
 0x657   :  { %1090 = vmatpush.bf16.msra.mxu2 %v1802_v45 }
 0x659   :  { %1074 = vmatpush.bf16.msra.mxu1 %v1834_v9  ;;  %v934_v9 = vperm.slane %v2502_v6, 0 }
 0x65b   :  { %1091 = vmatpush.bf16.msra.mxu2 %v1790_v52 }
 0x65d   :  { %1075 = vmatpush.bf16.msra.mxu1 %v1822_v17 }
 0x661   :  { %1076 = vmatpush.bf16.msra.mxu1 %v1810_v32 }
 0x665   :  { %1077 = vmatpush.bf16.msra.mxu1 %v1798_v41 }
 0x669   :  { %1078 = vmatpush.bf16.msra.mxu1 %v1786_v62 }
 0x6c3   :  { %v913_v55 = vpop.xlane.xlu0 %912 }
 0x6c4   :  { %v914_v56 = vmul.f32 0.03125, %v913_v55 }
 0x6c5   :  { %v917_v57 = vpop.xlane.xlu1 %916 }
 0x6c6   :  { %v919_v58 = vmul.f32 %v914_v56, %v914_v56  ;;  %v918_v59 = vmul.f32 0.03125, %v917_v57  ;;  %v921_v8 = vsub.f32 %v2496_v5, %v914_v56 }
 0x6c8   :  { %v920_v60 = vsub.f32 %v918_v59, %v919_v58 }
 0x6ca   :  { %v922_v61 = vadd.f32 1e-05, %v920_v60 }
 0x6cc   :  { %2157 = vrsqrt.f32 %v922_v61  ;;  %vm929_vm2 = vweird.f32 %v922_v61 }
 0x6d2   :  { %v2158_v63 = vpop.eup %2157 }
 0x6d3   :  { %v924_v0 = vmul.f32 %v2158_v63, %v922_v61  ;;  %vm930_vm1 = vweird.f32 %v2158_v63 }
 0x6d4   :  { %vm931_vm3 = vmor %vm929_vm2, %vm930_vm1 }
 0x6d5   :  { %v925_v1 = vmul.f32 %v2158_v63, %v924_v0 }
 0x6d7   :  { %v926_v2 = vmul.f32 0.5, %v925_v1 }
 0x6d9   :  { %v927_v3 = vsub.f32 1.5, %v926_v2 }
 0x6db   :  { %v928_v7 = vmul.f32 %v2158_v63, %v927_v3 }
 0x6dd   :  { %v932_v10 = vsel %vm931_vm3, %v2158_v63, %v928_v7 }
 0x6de   :  { %v933_v11 = vmul.f32 %v932_v10, %v921_v8 }
 0x6e0   :  { %v935_v12 = vmul.f32 %v934_v9, %v933_v11 }
 0x6e2   :  { %v937_v14 = vadd.f32 %v936_v29, %v935_v12 }
 0x6e4   :  { %v942_v15 = vpack.c.bf16 %v937_v14, %v911_v13 }
 0x6e6   :  { %1079 = vmatmul.bf16.vlgmr.msra.gmra.mxu1 %v942_v15  ;;  %1092 = vmatmul.bf16.vlgmr.msra.gmra.mxu2 %v942_v15 }
 0x6e7   :  { %1106 = vmatmul.bf16.vlgmr.msra.gmra.mxu3 %v942_v15 }
 0x763   :  { %v1080_v16 = vpop.f32.mrf.mxu1 }
 0x769   :  { %v1093_v17 = vpop.f32.mrf.mxu2 }
 0x76a   :  { %v1107_v21 = vpop.f32.mrf.mxu3  ;;  %v1115_v31 = vadd.f32 %v1114_v23, %v1093_v17 }
 0x76b   :  { %v1081_v28 = vpop.f32.mrf.mxu1  ;;  %v1119_v34 = vadd.f32 %v1118_v24, %v1107_v21 }
 0x76c   :  { %v1113_v35 = vadd.f32 %v1112_v27, %v1081_v28 }
 0x76e   :  { %v1122_v39 = vmul.f32 %v1113_v35, %v2450_v19  ;;  %v1123_v40 = vmul.f32 %v1113_v35, %v2453_v20  ;;  %v1124_v42 = vmul.f32 %v1113_v35, %v2462_v25  ;;  %v1125_v43 = vmul.f32 %v1113_v35, %v2465_v26 }
 0x770   :  { %v1126_v41 = vpack.c.bf16 %v1123_v40, %v1122_v39  ;;  %v1127_v44 = vpack.c.bf16 %v1125_v43, %v1124_v42  ;;  %v2104_v39 = vld [vmem:[#allocation8 + $0x2ac] sm:$0xf]  ;;  %v1905_v40 = vld [vmem:[#allocation8 + $0x2c0] sm:$0xf0]  ;;  %v2098_v42 = vld [vmem:[#allocation8 + $0x27c] sm:$0xf] }
 0x771   :  { %v1095_v30 = vpop.f32.mrf.mxu2  ;;  %v1901_v43 = vld [vmem:[#allocation8 + $0x290] sm:$0xf0] }
 0x772   :  { %v1116_v32 = vadd.f32 %v1114_v23, %v1095_v30  ;;  %v1109_v33 = vpop.f32.mrf.mxu3 }
 0x773   :  { %v1120_v36 = vadd.f32 %v1118_v24, %v1109_v33 }
 0x774   :  { %v1117_v37 = vpack.c.bf16 %v1116_v32, %v1115_v31 }
 0x775   :  { %v1121_v38 = vpack.c.bf16 %v1120_v36, %v1119_v34  ;;  %v2110_v36 = vld [vmem:[#allocation8 + $0x2dc] sm:$0xf] }
 0x776   :  { %1135 = vmatpush.bf16.xpose.msrb.mxu0 %v1117_v37  ;;  %v1909_v37 = vld [vmem:[#allocation8 + $0x2f0] sm:$0xf0] }
 0x777   :  { %1210 = vmatpush.bf16.msrb.mxu1 %v1121_v38  ;;  %v1912_v38 = vor.u32 %v2110_v36, %v1909_v37  ;;  %v1919_v36 = vld [vmem:[#allocation8 + $0x1c0] sm:$0xf]  ;;  %v2078_v37 = vld [vmem:[#allocation8 + $0x1d4] sm:$0xf0] }
 0x77d   :  { %1136 = vmatmul.bf16.vlgmr.msrb.gmra.mxu0 %v1126_v41  ;;  %v1908_v41 = vor.u32 %v2104_v39, %v1905_v40  ;;  %v1915_v39 = vld [vmem:[#allocation8 + $0x190] sm:$0xf]  ;;  %v2072_v40 = vld [vmem:[#allocation8 + $0x1a4] sm:$0xf0] }
 0x77e   :  { %1263 = vmatpush.bf16.msra.mxu0 %v1912_v38  ;;  %v1920_v38 = vor.u32 %v2078_v37, %v1919_v36  ;;  %v1999_v36 = vld [vmem:[#allocation11 + $0x54] sm:$0xf]  ;;  %v2120_v37 = vld [vmem:[#allocation11 + $0x58] sm:$0xf0] }
 0x782   :  { %1264 = vmatpush.bf16.msra.mxu0 %v1908_v41  ;;  %v1916_v41 = vor.u32 %v2072_v40, %v1915_v39  ;;  %v2000_v40 = vor.u32 %v2120_v37, %v1999_v36 }
 0x78d   :  { %1141 = vmatmul.bf16.gmra.mxu0 %v1127_v44  ;;  %v1904_v44 = vor.u32 %v2098_v42, %v1901_v43 }
 0x78f   :  { %1265 = vmatpush.bf16.msra.mxu0 %v1904_v44 }
 0x7fa   :  { %v1137_v45 = vpop.f32.mrf.mxu0 }
 0x7fb   :  { %v1147_v53 = vmul.f32 0.35355338, %v1137_v45  ;;  %v2092_v45 = vld [vmem:[#allocation8 + $0x24c] sm:$0xf] }
 0x7fd   :  { %v1151_v46 = vsel %vm584_vm13, %v1147_v53, -inf }
 0x7fe   :  { %1152 = vmax.xlane.f32.xlu2 %v1151_v46 }
 0x802   :  { %v1139_v47 = vpop.f32.mrf.mxu0 }
 0x803   :  { %v1148_v48 = vmul.f32 0.35355338, %v1139_v47  ;;  %v2086_v47 = vld [vmem:[#allocation8 + $0x21c] sm:$0xf] }
 0x805   :  { %v1154_v62 = vsel %vm584_vm13, %v1148_v48, -inf }
 0x806   :  { %1155 = vmax.xlane.f32.xlu0 %v1154_v62 }
 0x80a   :  { %v1142_v49 = vpop.f32.mrf.mxu0 }
 0x80b   :  { %v1149_v50 = vmul.f32 0.35355338, %v1142_v49  ;;  %v2080_v49 = vld [vmem:[#allocation8 + $0x1ec] sm:$0xf] }
 0x80d   :  { %v1157_v51 = vsel %vm584_vm13, %v1149_v50, -inf }
 0x80e   :  { %1158 = vmax.xlane.f32.xlu1 %v1157_v51 }
 0x812   :  { %v1144_v52 = vpop.f32.mrf.mxu0 }
 0x813   :  { %v1150_v54 = vmul.f32 0.35355338, %v1144_v52  ;;  %v2074_v52 = vld [vmem:[#allocation8 + $0x1bc] sm:$0xf] }
 0x815   :  { %v1160_v55 = vsel %vm584_vm13, %v1150_v54, -inf }
 0x816   :  { %1161 = vmax.xlane.f32.xlu2 %v1160_v55 }
 0x871   :  { %v1153_v56 = vpop.xlane.xlu2 %1152 }
 0x872   :  { %v1163_v57 = vsub.f32 %v1147_v53, %v1153_v56  ;;  %v1897_v53 = vld [vmem:[#allocation8 + $0x260] sm:$0xf0]  ;;  %v2068_v56 = vld [vmem:[#allocation8 + $0x18c] sm:$0xf] }
 0x873   :  { %v1900_v46 = vor.u32 %v2092_v45, %v1897_v53 }
 0x874   :  { %v1167_v58 = vmul.f32 1.442695, %v1163_v57  ;;  %v1881_v57 = vld [vmem:[#allocation8 + $0x1a0] sm:$0xf0] }
 0x875   :  { %1266 = vmatpush.bf16.msra.mxu0 %v1900_v46  ;;  %v2111_v46 = vld [vmem:[#allocation8 + $0x2e4] sm:$0xf] }
 0x876   :  { %2159 = vpow2.f32 %v1167_v58  ;;  %v1884_v58 = vor.u32 %v2068_v56, %v1881_v57 }
 0x879   :  { %v1156_v59 = vpop.xlane.xlu0 %1155 }
 0x87a   :  { %v1164_v60 = vsub.f32 %v1148_v48, %v1156_v59  ;;  %v1893_v48 = vld [vmem:[#allocation8 + $0x230] sm:$0xf0] }
 0x87b   :  { %v1896_v62 = vor.u32 %v2086_v47, %v1893_v48  ;;  %v1973_v47 = vld [vmem:[#allocation8 + $0x2f8] sm:$0xf0] }
 0x87c   :  { %v2160_v61 = vpop.eup %2159  ;;  %v1169_v63 = vmul.f32 1.442695, %v1164_v60  ;;  %v1976_v48 = vor.u32 %v2111_v46, %v1973_v47  ;;  %v1991_v46 = vld [vmem:[#allocation11 + $0x34] sm:$0xf] }
 0x87d   :  { %v1175_v0 = vsel %vm584_vm13, %v2160_v61, 0.0  ;;  %1267 = vmatpush.bf16.msra.mxu0 %v1896_v62 }
 0x87e   :  { %2161 = vpow2.f32 %v1169_v63  ;;  %1176 = vadd.xlane.f32.xlu0 %v1175_v0  ;;  %1409 = vmatpush.bf16.msrb.mxu2 %v1976_v48 }
 0x881   :  { %v1159_v1 = vpop.xlane.xlu1 %1158 }
 0x882   :  { %v1165_v2 = vsub.f32 %v1149_v50, %v1159_v1  ;;  %v1889_v50 = vld [vmem:[#allocation8 + $0x200] sm:$0xf0] }
 0x883   :  { %v1892_v51 = vor.u32 %v2080_v49, %v1889_v50 }
 0x884   :  { %v2162_v3 = vpop.eup %2161  ;;  %v1171_v7 = vmul.f32 1.442695, %v1165_v2 }
 0x885   :  { %v1178_v8 = vsel %vm584_vm13, %v2162_v3, 0.0  ;;  %1268 = vmatpush.bf16.msra.mxu0 %v1892_v51 }
 0x886   :  { %2163 = vpow2.f32 %v1171_v7  ;;  %1179 = vadd.xlane.f32.xlu1 %v1178_v8 }
 0x889   :  { %v1162_v9 = vpop.xlane.xlu2 %1161 }
 0x88a   :  { %v1166_v10 = vsub.f32 %v1150_v54, %v1162_v9  ;;  %v1885_v54 = vld [vmem:[#allocation8 + $0x1d0] sm:$0xf0] }
 0x88b   :  { %v1888_v55 = vor.u32 %v2074_v52, %v1885_v54 }
 0x88c   :  { %v2164_v11 = vpop.eup %2163  ;;  %v1173_v29 = vmul.f32 1.442695, %v1166_v10 }
 0x88d   :  { %v1181_v12 = vsel %vm584_vm13, %v2164_v11, 0.0  ;;  %1269 = vmatpush.bf16.msra.mxu0 %v1888_v55 }
 0x88e   :  { %2165 = vpow2.f32 %v1173_v29  ;;  %1182 = vadd.xlane.f32.xlu2 %v1181_v12 }
 0x891   :  { %1270 = vmatpush.bf16.msra.mxu0 %v1884_v58  ;;  %v1299_v58 = vperm.slane %v2502_v6, 2 }
 0x894   :  { %v2166_v13 = vpop.eup %2165 }
 0x895   :  { %v1184_v14 = vsel %vm584_vm13, %v2166_v13, 0.0 }
 0x896   :  { %1185 = vadd.xlane.f32.xlu0 %v1184_v14  ;;  %v2114_v14 = vld [vmem:[#allocation8 + $0x2f4] sm:$0xf0] }
 0x8f1   :  { %v1177_v15 = vpop.xlane.xlu0 %1176 }
 0x8f2   :  { %2167 = vrcp.f32 %v1177_v15  ;;  %v1939_v15 = vld [vmem:[#allocation8 + $0x2b0] sm:$0xf] }
 0x8f8   :  { %v2168_v17 = vpop.eup %2167 }
 0x8f9   :  { %v1180_v16 = vpop.xlane.xlu1 %1179  ;;  %v1191_v23 = vmul.f32 %v2168_v17, %v2160_v61 }
 0x8fa   :  { %2169 = vrcp.f32 %v1180_v16  ;;  %v2108_v16 = vld [vmem:[#allocation8 + $0x2c4] sm:$0xf0] }
 0x8fb   :  { %v1940_v17 = vor.u32 %v2108_v16, %v1939_v15  ;;  %v2075_v16 = vld [vmem:[#allocation8 + $0x1c4] sm:$0xf] }
 0x900   :  { %v2170_v21 = vpop.eup %2169 }
 0x901   :  { %v1192_v24 = vmul.f32 %v2170_v21, %v2162_v3  ;;  %v1183_v28 = vpop.xlane.xlu2 %1182  ;;  %v1935_v21 = vld [vmem:[#allocation8 + $0x280] sm:$0xf] }
 0x902   :  { %2171 = vrcp.f32 %v1183_v28 }
 0x903   :  { %v1195_v27 = vpack.c.bf16 %v1192_v24, %v1191_v23  ;;  %v2102_v23 = vld [vmem:[#allocation8 + $0x294] sm:$0xf0] }
 0x904   :  { %v1936_v24 = vor.u32 %v2102_v23, %v1935_v21  ;;  %v2069_v23 = vld [vmem:[#allocation8 + $0x194] sm:$0xf] }
 0x905   :  { %1879 = vmatmul.msk.bf16.vlgmr.msrb.gmra.mxu1 %vm584_vm13, %v1195_v27  ;;  %v2096_v27 = vld [vmem:[#allocation8 + $0x264] sm:$0xf0] }
 0x908   :  { %v2172_v31 = vpop.eup %2171 }
 0x909   :  { %v1186_v30 = vpop.xlane.xlu0 %1185  ;;  %v1193_v33 = vmul.f32 %v2172_v31, %v2164_v11  ;;  %v1230_v11 = vperm.slane %v2502_v6, 4  ;;  %v2090_v31 = vld [vmem:[#allocation8 + $0x234] sm:$0xf0] }
 0x90a   :  { %2173 = vrcp.f32 %v1186_v30  ;;  %v1927_v30 = vld [vmem:[#allocation8 + $0x220] sm:$0xf] }
 0x910   :  { %v2174_v32 = vpop.eup %2173 }
 0x911   :  { %v1194_v34 = vmul.f32 %v2174_v32, %v2166_v13  ;;  %v1928_v32 = vor.u32 %v2090_v31, %v1927_v30  ;;  %v2003_v30 = vld [vmem:[#allocation11 + $0x64] sm:$0xf]  ;;  %v1304_v31 = vperm.slane %v2507_v22, 1  ;;  %v2118_v22 = vld [vmem:[#allocation11 + $0x38] sm:$0xf0] }
 0x913   :  { %v1196_v35 = vpack.c.bf16 %v1194_v34, %v1193_v33  ;;  %v1923_v33 = vld [vmem:[#allocation8 + $0x1f0] sm:$0xf]  ;;  %v2084_v34 = vld [vmem:[#allocation8 + $0x204] sm:$0xf0] }
 0x915   :  { %1880 = vmatmul.msk.bf16.gmra.mxu1 %vm584_vm13, %v1196_v35  ;;  %v1924_v35 = vor.u32 %v2084_v34, %v1923_v33  ;;  %v2121_v33 = vld [vmem:[#allocation11 + $0x68] sm:$0xf0] }
 0x916   :  { %v2004_v34 = vor.u32 %v2121_v33, %v2003_v30 }
 0x982   :  { %v1212_v59 = vpop.f32.mrf.mxu1 }
 0x983   :  { %v1222_v0 = vmul.f32 %v1212_v59, %v2450_v19 }
 0x98a   :  { %v1214_v60 = vpop.f32.mrf.mxu1 }
 0x98b   :  { %v1223_v63 = vmul.f32 %v1214_v60, %v2453_v20 }
 0x98d   :  { %v1226_v2 = vadd.f32 %v1223_v63, %v1222_v0 }
 0x992   :  { %v1217_v61 = vpop.f32.mrf.mxu1 }
 0x993   :  { %v1224_v1 = vmul.f32 %v1217_v61, %v2462_v25  ;;  %v1943_v25 = vld [vmem:[#allocation8 + $0x2e0] sm:$0xf]  ;;  %v1301_v61 = vperm.slane %v2502_v6, 3 }
 0x995   :  { %v1227_v7 = vadd.f32 %v1226_v2, %v1224_v1  ;;  %v2105_v2 = vld [vmem:[#allocation8 + $0x2b4] sm:$0xf] }
 0x99a   :  { %v1219_v3 = vpop.f32.mrf.mxu1 }
 0x99b   :  { %v1225_v8 = vmul.f32 %v1219_v3, %v2465_v26  ;;  %v1944_v26 = vor.u32 %v2114_v14, %v1943_v25  ;;  %v1969_v3 = vld [vmem:[#allocation8 + $0x2c8] sm:$0xf0]  ;;  %v2081_v14 = vld [vmem:[#allocation8 + $0x1f4] sm:$0xf] }
 0x99d   :  { %v1228_v9 = vadd.f32 %v1227_v7, %v1225_v8  ;;  %1353 = vmatpush.bf16.msra.mxu1 %v1944_v26  ;;  %v1972_v7 = vor.u32 %v2105_v2, %v1969_v3  ;;  %v2099_v8 = vld [vmem:[#allocation8 + $0x284] sm:$0xf]  ;;  %v1953_v26 = vld [vmem:[#allocation8 + $0x208] sm:$0xf0] }
 0x99e   :  { %v1956_v15 = vor.u32 %v2081_v14, %v1953_v26 }
 0x99f   :  { %v1229_v10 = vpack.c.bf16 %v1228_v9, %v1228_v9  ;;  %1410 = vmatpush.bf16.msrb.mxu2 %v1972_v7  ;;  %v1965_v9 = vld [vmem:[#allocation8 + $0x298] sm:$0xf0] }
 0x9a1   :  { %1271 = vmatmul.bf16.vlgmr.msra.gmra.mxu0 %v1229_v10  ;;  %1354 = vmatpush.bf16.msra.mxu1 %v1940_v17  ;;  %v1968_v10 = vor.u32 %v2099_v8, %v1965_v9  ;;  %v1949_v17 = vld [vmem:[#allocation8 + $0x1d8] sm:$0xf0] }
 0x9a2   :  { %v1952_v21 = vor.u32 %v2075_v16, %v1949_v17 }
 0x9a3   :  { %1411 = vmatpush.bf16.msrb.mxu2 %v1968_v10  ;;  %v2179_v10 = vld [vmem:[#allocation9 + $0x20] sm:$0xff] }
 0x9a5   :  { %1355 = vmatpush.bf16.msra.mxu1 %v1936_v24  ;;  %v1945_v24 = vld [vmem:[#allocation8 + $0x1a8] sm:$0xf0] }
 0xa1e   :  { %v1272_v29 = vpop.f32.mrf.mxu0 }
 0xa1f   :  { %v1273_v12 = vadd.f32 %v1272_v29, %v1230_v11  ;;  %v2093_v11 = vld [vmem:[#allocation8 + $0x254] sm:$0xf]  ;;  %v1961_v29 = vld [vmem:[#allocation8 + $0x268] sm:$0xf0] }
 0xa21   :  { %v2532_v13 = vadd.f32 %v1273_v12, %v2496_v5  ;;  %v1931_v5 = vld [vmem:[#allocation8 + $0x250] sm:$0xf]  ;;  %v1964_v12 = vor.u32 %v2093_v11, %v1961_v29  ;;  %v1442_v11 = vperm.slane %v2179_v10, 1 }
 0xa22   :  { %v1932_v28 = vor.u32 %v2096_v27, %v1931_v5  ;;  %v1948_v5 = vor.u32 %v2069_v23, %v1945_v24  ;;  %v2007_v27 = vld [vmem:[#allocation11 + $0x74] sm:$0xf] }
 0xa23   :  { %1277 = vadd.xlane.f32.xlu1 %v2532_v13  ;;  %v1280_v19 = vmul.f32 %v2532_v13, %v2532_v13  ;;  %1412 = vmatpush.bf16.msrb.mxu2 %v1964_v12  ;;  %v2010_v12 = vsel %vm1507_vm7, 1.0, %v2367_v18 }
 0xa24   :  { %1356 = vmatpush.bf16.msra.mxu1 %v1932_v28  ;;  %v2122_v28 = vld [vmem:[#allocation11 + $0x78] sm:$0xf0] }
 0xa25   :  { %1281 = vadd.xlane.f32.xlu2 %v1280_v19  ;;  %v2087_v19 = vld [vmem:[#allocation8 + $0x224] sm:$0xf] }
 0xa26   :  { %v1274_v20 = vpop.f32.mrf.mxu0 }
 0xa27   :  { %v1957_v20 = vld [vmem:[#allocation8 + $0x238] sm:$0xf0] }
 0xa28   :  { %1357 = vmatpush.bf16.msra.mxu1 %v1928_v32  ;;  %v1960_v25 = vor.u32 %v2087_v19, %v1957_v20  ;;  %v2008_v32 = vor.u32 %v2122_v28, %v2007_v27  ;;  %v2009_v19 = vsel %vm1504_vm8, 1.0, %v2367_v18 }
 0xa2a   :  { %1413 = vmatpush.bf16.msrb.mxu2 %v1960_v25  ;;  %1491 = vmatpush.bf16.msrb.mxu3 %v2008_v32 }
 0xa2c   :  { %1358 = vmatpush.bf16.msra.mxu1 %v1924_v35 }
 0xa2e   :  { %1414 = vmatpush.bf16.msrb.mxu2 %v1956_v15  ;;  %1492 = vmatpush.bf16.msrb.mxu3 %v2004_v34 }
 0xa30   :  { %1359 = vmatpush.bf16.msra.mxu1 %v1920_v38 }
 0xa32   :  { %1415 = vmatpush.bf16.msrb.mxu2 %v1952_v21  ;;  %1493 = vmatpush.bf16.msrb.mxu3 %v2000_v40 }
 0xa34   :  { %1360 = vmatpush.bf16.msra.mxu1 %v1916_v41  ;;  %v1995_v41 = vld [vmem:[#allocation11 + $0x44] sm:$0xf] }
 0xa36   :  { %1416 = vmatpush.bf16.msrb.mxu2 %v1948_v5 }
 0xa96   :  { %v1278_v42 = vpop.xlane.xlu1 %1277 }
 0xa97   :  { %v1279_v43 = vmul.f32 0.03125, %v1278_v42  ;;  %v2119_v42 = vld [vmem:[#allocation11 + $0x48] sm:$0xf0] }
 0xa98   :  { %v1282_v44 = vpop.xlane.xlu2 %1281 }
 0xa99   :  { %v1284_v45 = vmul.f32 %v1279_v43, %v1279_v43  ;;  %v1283_v53 = vmul.f32 0.03125, %v1282_v44  ;;  %v1286_v57 = vsub.f32 %v2532_v13, %v1279_v43 }
 0xa9b   :  { %v1285_v62 = vsub.f32 %v1283_v53, %v1284_v45  ;;  %v1996_v45 = vor.u32 %v2119_v42, %v1995_v41 }
 0xa9d   :  { %v1287_v49 = vadd.f32 1e-05, %v1285_v62  ;;  %1494 = vmatpush.bf16.msrb.mxu3 %v1996_v45  ;;  %v1992_v62 = vor.u32 %v2118_v22, %v1991_v46 }
 0xa9f   :  { %2175 = vrsqrt.f32 %v1287_v49  ;;  %vm1294_vm5 = vweird.f32 %v1287_v49 }
 0xaa1   :  { %1495 = vmatpush.bf16.msrb.mxu3 %v1992_v62 }
 0xaa5   :  { %v2176_v50 = vpop.eup %2175 }
 0xaa6   :  { %v1289_v51 = vmul.f32 %v2176_v50, %v1287_v49  ;;  %vm1295_vm4 = vweird.f32 %v2176_v50  ;;  %v1987_v49 = vld [vmem:[#allocation11 + $0x24] sm:$0xf] }
 0xaa7   :  { %vm1296_vm6 = vmor %vm1294_vm5, %vm1295_vm4 }
 0xaa8   :  { %v1290_v52 = vmul.f32 %v2176_v50, %v1289_v51 }
 0xaaa   :  { %v1291_v54 = vmul.f32 0.5, %v1290_v52 }
 0xaac   :  { %v1292_v55 = vsub.f32 1.5, %v1291_v54 }
 0xaae   :  { %v1293_v56 = vmul.f32 %v2176_v50, %v1292_v55 }
 0xab0   :  { %v1297_v59 = vsel %vm1296_vm6, %v2176_v50, %v1293_v56  ;;  %v2117_v50 = vld [vmem:[#allocation11 + $0x28] sm:$0xf0] }
 0xab1   :  { %v1298_v60 = vmul.f32 %v1297_v59, %v1286_v57  ;;  %v1988_v51 = vor.u32 %v2117_v50, %v1987_v49  ;;  %v2116_v59 = vld [vmem:[#allocation11 + $0x18] sm:$0xf0] }
 0xab3   :  { %v1300_v63 = vmul.f32 %v1299_v58, %v1298_v60  ;;  %1496 = vmatpush.bf16.msrb.mxu3 %v1988_v51  ;;  %v1983_v58 = vld [vmem:[#allocation11 + $0x14] sm:$0xf] }
 0xab4   :  { %v1984_v60 = vor.u32 %v2116_v59, %v1983_v58 }
 0xab5   :  { %v1302_v0 = vadd.f32 %v1301_v61, %v1300_v63  ;;  %v1979_v61 = vld [vmem:[#allocation11 + $0x4] sm:$0xf]  ;;  %v2115_v63 = vld [vmem:[#allocation11 + $0x8] sm:$0xf0] }
 0xab7   :  { %v1303_v1 = vpack.c.bf16 %v1302_v0, %v1302_v0  ;;  %1497 = vmatpush.bf16.msrb.mxu3 %v1984_v60  ;;  %v1980_v0 = vor.u32 %v2115_v63, %v1979_v61 }
 0xab9   :  { %1361 = vmatmul.bf16.vlgmr.msra.gmra.mxu1 %v1303_v1  ;;  %v1376_v1 = vperm.slane %v2502_v6, 5 }
 0xabb   :  { %1498 = vmatpush.bf16.msrb.mxu3 %v1980_v0 }
 0xb36   :  { %v1362_v35 = vpop.f32.mrf.mxu1 }
 0xb37   :  { %v1363_v38 = vadd.f32 %v1362_v35, %v1304_v31 }
 0xb39   :  { %v1366_v39 = vmul.f32 %v1363_v38, %v1363_v38 }
 0xb3b   :  { %v1367_v43 = vmul.f32 %v1366_v39, %v1363_v38 }
 0xb3d   :  { %v1368_v44 = vmul.f32 0.044715, %v1367_v43 }
 0xb3e   :  { %v1364_v53 = vpop.f32.mrf.mxu1 }
 0xb3f   :  { %v1369_v47 = vadd.f32 %v1368_v44, %v1363_v38 }
 0xb41   :  { %v1370_v48 = vmul.f32 0.7978846, %v1369_v47 }
 0xb43   :  { %2177 = vtanh.f32 %v1370_v48 }
 0xb49   :  { %v2178_v52 = vpop.eup %2177 }
 0xb4a   :  { %v1372_v54 = vadd.f32 1.0, %v2178_v52 }
 0xb4c   :  { %v1373_v55 = vmul.f32 0.5, %v1372_v54 }
 0xb4e   :  { %v1374_v56 = vmul.f32 %v1373_v55, %v1363_v38 }
 0xb50   :  { %v1375_v57 = vpack.c.bf16 %v1374_v56, %v1374_v56 }
 0xb52   :  { %1417 = vmatmul.bf16.vlgmr.msrb.gmra.mxu2 %v1375_v57 }
 0xbd5   :  { %v1418_v2 = vpop.f32.mrf.mxu2 }
 0xbd6   :  { %v1419_v3 = vadd.f32 %v1418_v2, %v1376_v1 }
 0xbd8   :  { %v1422_v7 = vadd.f32 %v1419_v3, %v2532_v13 }
 0xbda   :  { %1424 = vst [vmem:[#allocation13 + $0x8] sm:$0xff] %v1422_v7  ;;  %v1425_v8 = vpack.c.bf16 %v1422_v7, %v1422_v7 }
 0xbdb   :  { %1543 = dma.vmem_to_hbm [thread:$0]  %s1536_s4, 256, %s1538_s25, [#allocation14], %s2359_s29, %s2359_s29, %s2360_s30  }
 0xbdc   :  { %1499 = vmatmul.bf16.vlgmr.msrb.gmra.mxu3 %v1425_v8 }
 0xbdd   :  { %v1420_v9 = vpop.f32.mrf.mxu2 }
 0xc5f   :  { %v1500_v29 = vpop.f32.mrf.mxu3 }
 0xc60   :  { %v1501_v6 = vadd.f32 %v1500_v29, %v1442_v11 }
 0xc62   :  { %v1514_v13 = vmul.f32 %v2010_v12, %v1501_v6  ;;  %v1510_v20 = vmul.f32 %v2009_v19, %v1501_v6 }
 0xc64   :  { %1515 = vadd.xlane.f32.xlu1 %v1514_v13  ;;  %1511 = vadd.xlane.f32.xlu0 %v1510_v20 }
 0xc67   :  { %v1502_v4 = vpop.f32.mrf.mxu3 }
 0xcd7   :  { %v1512_v25 = vpop.xlane.xlu0 %1511  ;;  %v1516_v14 = vpop.xlane.xlu1 %1515 }
 0xcd8   :  { %v1513_v18 = vmul.f32 0.5, %v1512_v25 }
 0xcda   :  { %v1517_v26 = vsub.f32 %v1516_v14, %v1513_v18 }
 0xcdc   :  { %v1518_v15 = vadd.f32 %v1517_v26, %v1501_v6 }
 0xcde   :  { %1519 = vst [vmem:[#allocation12] sm:$0xff] %v1518_v15 }
 0xcdf   :  { %1530 = dma.vmem_to_hbm [thread:$0]  %s1526_s27, 128, %s1528_s6, [#allocation5]  }
 0xce0   :  { %2354 = dma.done.wait [#allocation5], 128  }
 0xce1   :  { %2355 = vsyncadd [#allocation5], 4294967168 }
 0xce2   :  { %2356 = dma.done.wait [#allocation14], 256  }
 0xce3   :  { %2357 = vsyncadd [#allocation14], 4294967040 }
 0xce4   :  { %1552 = vsyncpa [#allocation4], 1 }
 0xce5   :  { %1553 = vsyncpa [#allocation7], 1 }
 0xce6   :  { %1554 = vsyncpa [#allocation10], 1 }
 0xce7   :  { %1555 = vsyncpa [#allocation5], 1 }
 0xce8   :  { %1556 = vsyncpa [#allocation14], 1 }

</bundles_post_ra>
